<compile_context>
chip_gen: v7x
topology: tpu7x:2x2x1
jax: 0.10.0
libtpu: 0.0.40
codegen_flags: <defaults>
</compile_context>

<pallas_src>
import functools

import jax
import jax.numpy as jnp
from jax.experimental import pallas as pl
from jax.experimental.pallas import tpu as pltpu

LANE = 128
_MID_COL_OFF = 16          # bf16 (16,128)-tile aligned interior offset in mid


def _round_up(x, m):
    return -(-x // m) * m


def _pick_rows(n_rows, width, lanes, budget_elems=32 * 1024):
    """Largest row chunk whose (rows, width, lanes) f32 accumulator stays
    within ~32 vregs (128 KiB); prefer chunks keeping (rows*width) % 8 == 0 so
    flattened chunk stores start sublane-aligned."""
    cap = max(1, budget_elems // max(1, width * lanes))
    r = max(1, min(n_rows, cap))
    for cand in range(r, 0, -1):
        if (cand * width) % 8 == 0:
            return cand
    return r


def _vmem_limit_bytes():
    try:
        cap = int(pltpu.get_tpu_info().vmem_capacity_bytes)
    except Exception:                                  # conservative fallback
        cap = 64 * 1024 * 1024
    return max(32 * 1024 * 1024, min(int(cap * 0.6), 96 * 1024 * 1024))


def _fused_stem_kernel(x_ref, wv1_ref, wpw1_ref, s1_ref, b1_ref,
                       wdw2_ref, wpw2_ref, s2_ref, b2_ref,
                       o_ref, mid_ref,
                       *, K, stride, pad, Ho1, Wo1, Ho2, Wo2,
                       rows1, rows2, coff):
    """Fused relu->dw(s)->pw->BN->relu->dw(1)->pw->BN for one image.

    x_ref  : (1, Hps, s, Wps, s*C) bf16   x[0,a,ph,b,pw*C+c]==xpad[a*s+ph,b*s+pw,c]
    wv1_ref: (K, ceil(K/s), s*C)   f32    stage-1 depthwise, kw-phase on lanes
    wpw1_ref: (s*C, Cp)            bf16   stage-1 pointwise (phase-expanded)
    wdw2_ref: (K, K, Cp)           f32    stage-2 depthwise
    wpw2_ref: (Cp, Cp)             bf16   stage-2 pointwise
    s*_ref, b*_ref: (1, Cp)        f32    folded BatchNorm scale / shift
    o_ref  : (1, Ho2*Wo2, Cp)      f32    lane-dense 2-D output slab
    mid_ref: (Ho1+2p, Wm, Cp)      bf16   VMEM scratch, interior at (p, coff)
    """
    s = stride
    KW0 = wv1_ref.shape[1]
    CW = wv1_ref.shape[2]
    Cp = o_ref.shape[2]
    Hm, Wm, _ = mid_ref.shape
    roff = pad
    f32 = jnp.float32
    mdt = mid_ref.dtype

    wv1 = wv1_ref[...].astype(f32)            # (K, KW0, CW)
    wdw2 = wdw2_ref[...].astype(f32)          # (K, K, Cp)
    s1 = s1_ref[0, :]
    b1 = b1_ref[0, :]
    s2 = s2_ref[0, :]
    b2 = b2_ref[0, :]

    # --- zero only the halo ring (interior is fully overwritten below) ------
    if pad > 0:
        mid_ref[pl.ds(0, roff), :, :] = jnp.zeros((roff, Wm, Cp), mdt)
        bot = Hm - roff - Ho1
        if bot > 0:
            mid_ref[pl.ds(roff + Ho1, bot), :, :] = jnp.zeros((bot, Wm, Cp), mdt)
        mid_ref[pl.ds(roff, Ho1), pl.ds(0, coff), :] = (
            jnp.zeros((Ho1, coff, Cp), mdt))
        rgt = Wm - coff - Wo1
        if rgt > 0:
            mid_ref[pl.ds(roff, Ho1), pl.ds(coff + Wo1, rgt), :] = (
                jnp.zeros((Ho1, rgt, Cp), mdt))

    # --------- stage 1: ReLU -> depthwise(stride s) -> pw -> BN -> ReLU -----
    def stage1_chunk(q0, nrows):
        acc = jnp.zeros((nrows, Wo1, CW), f32)
        for kh in range(K):
            oh0, ph = kh // s, kh % s
            # One load + one ReLU per kh band; the ow0 taps are value-slices.
            band = x_ref[0, pl.ds(q0 + oh0, nrows), ph, :, :].astype(f32)
            band = jnp.maximum(band, 0.0)
            for ow0 in range(KW0):
                acc = acc + band[:, ow0:ow0 + Wo1, :] * wv1[kh, ow0]
        # Pointwise on the MXU; kw stride-phase sum absorbed by wpw1 expansion.
        y = jnp.dot(acc.reshape(nrows * Wo1, CW).astype(jnp.bfloat16),
                    wpw1_ref[...], preferred_element_type=f32)
        y = jnp.maximum(y * s1 + b1, 0.0)
        mid_ref[pl.ds(roff + q0, nrows), pl.ds(coff, Wo1), :] = (
            y.reshape(nrows, Wo1, Cp).astype(mdt))

    n1 = Ho1 // rows1
    rem1 = Ho1 - n1 * rows1
    if n1 <= 8:
        for c in range(n1):
            stage1_chunk(c * rows1, rows1)
    else:
        @pl.loop(0, n1)
        def _(c):
            stage1_chunk(c * rows1, rows1)
    if rem1:
        stage1_chunk(n1 * rows1, rem1)

    # ------------- stage 2: depthwise(stride 1) -> pw -> BN -----------------
    def stage2_chunk(r0, nrows):
        acc = jnp.zeros((nrows, Wo2, Cp), f32)
        for kh in range(K):
            for kw in range(K):
                tap = mid_ref[pl.ds(r0 + kh, nrows),
                              pl.ds(coff - pad + kw, Wo2), :].astype(f32)
                acc = acc + tap * wdw2[kh, kw]
        y = jnp.dot(acc.reshape(nrows * Wo2, Cp).astype(jnp.bfloat16),
                    wpw2_ref[...], preferred_element_type=f32)
        y = y * s2 + b2
        o_ref[0, pl.ds(r0 * Wo2, nrows * Wo2), :] = y.astype(o_ref.dtype)

    n2 = Ho2 // rows2
    rem2 = Ho2 - n2 * rows2
    if n2 <= 8:
        for c in range(n2):
            stage2_chunk(c * rows2, rows2)
    else:
        @pl.loop(0, n2)
        def _(c):
            stage2_chunk(c * rows2, rows2)
    if rem2:
        stage2_chunk(n2 * rows2, rem2)


def branch_separables_stem(x_nchw, params, *, stride, padding):
    """PyTorch-equivalent forward (inference-mode BN); input/output NCHW f32."""
    N, C, H, W = x_nchw.shape
    K = params["dw1"].shape[0]
    Cout = params["pw1"].shape[1]
    s, p = stride, padding

    Ho1 = (H + 2 * p - K) // s + 1
    Wo1 = (W + 2 * p - K) // s + 1
    Ho2 = Ho1 + 2 * p - K + 1
    Wo2 = Wo1 + 2 * p - K + 1
    Cp = _round_up(Cout, LANE)
    KW0 = -(-K // s)

    # NCHW -> NHWC (bf16), zero-pad, then a *free* (no-transpose) polyphase
    # reshape:  xr[n, a, ph, b, pw*C + c] == xpad[n, a*s + ph, b*s + pw, c]
    x = jnp.transpose(x_nchw, (0, 2, 3, 1)).astype(jnp.bfloat16)
    Hp, Wp = H + 2 * p, W + 2 * p
    Hp2, Wp2 = _round_up(Hp, s), _round_up(Wp, s)
    xpad = jnp.pad(x, ((0, 0), (p, p + Hp2 - Hp), (p, p + Wp2 - Wp), (0, 0)))
    Hps, Wps, CW = Hp2 // s, Wp2 // s, s * C
    xr = xpad.reshape(N, Hps, s, Wps, CW)

    # Stage-1 weights: fold the kw stride-phase onto the lane axis; pointwise
    # weights pre-expanded to (s*C, Cp) and stored bf16 (MXU operand dtype).
    dw1 = jnp.pad(params["dw1"], ((0, 0), (0, KW0 * s - K), (0, 0)))
    wv1 = dw1.reshape(K, KW0, CW)
    wpw1 = jnp.pad(jnp.tile(params["pw1"], (s, 1)),
                   ((0, 0), (0, Cp - Cout))).astype(jnp.bfloat16)
    s1 = jnp.pad(params["scale1"], (0, Cp - Cout)).reshape(1, Cp)
    b1 = jnp.pad(params["shift1"], (0, Cp - Cout)).reshape(1, Cp)
    # Stage-2 weights: pad channels to Cp (padded lanes stay exactly zero).
    wdw2 = jnp.pad(params["dw2"], ((0, 0), (0, 0), (0, Cp - Cout)))
    wpw2 = jnp.pad(params["pw2"],
                   ((0, Cp - Cout), (0, Cp - Cout))).astype(jnp.bfloat16)
    s2 = jnp.pad(params["scale2"], (0, Cp - Cout)).reshape(1, Cp)
    b2 = jnp.pad(params["shift2"], (0, Cp - Cout)).reshape(1, Cp)

    # Register-tile row-chunk sizes (chunk accumulator <= ~32 vregs).
    rows1 = _pick_rows(Ho1, Wo1, Cp)
    rows2 = _pick_rows(Ho2, Wo2, Cp)

    # bf16 mid scratch with zero halo; interior column offset is a bf16
    # (16,128)-tile boundary so the per-chunk interior stores are aligned.
    coff = _MID_COL_OFF
    Hm = Ho1 + 2 * p
    Wm = _round_up(coff + Wo1 + p, 16)

    kernel = functools.partial(
        _fused_stem_kernel, K=K, stride=s, pad=p,
        Ho1=Ho1, Wo1=Wo1, Ho2=Ho2, Wo2=Wo2,
        rows1=rows1, rows2=rows2, coff=coff)

    out = pl.pallas_call(
        kernel,
        out_shape=jax.ShapeDtypeStruct((N, Ho2 * Wo2, Cp), jnp.float32),
        grid_spec=pltpu.PrefetchScalarGridSpec(
            num_scalar_prefetch=0,
            grid=(N,),
            in_specs=[
                pl.BlockSpec((1, Hps, s, Wps, CW), lambda n: (n, 0, 0, 0, 0)),
                pl.BlockSpec((K, KW0, CW), lambda n: (0, 0, 0)),
                pl.BlockSpec((CW, Cp), lambda n: (0, 0)),
                pl.BlockSpec((1, Cp), lambda n: (0, 0)),
                pl.BlockSpec((1, Cp), lambda n: (0, 0)),
                pl.BlockSpec((K, K, Cp), lambda n: (0, 0, 0)),
                pl.BlockSpec((Cp, Cp), lambda n: (0, 0)),
                pl.BlockSpec((1, Cp), lambda n: (0, 0)),
                pl.BlockSpec((1, Cp), lambda n: (0, 0)),
            ],
            out_specs=pl.BlockSpec((1, Ho2 * Wo2, Cp), lambda n: (n, 0, 0)),
            scratch_shapes=[pltpu.VMEM((Hm, Wm, Cp), jnp.bfloat16)]),
        compiler_params=pltpu.CompilerParams(
            dimension_semantics=("parallel",),
            vmem_limit_bytes=_vmem_limit_bytes()),
    )(xr, wv1, wpw1, s1, b1, wdw2, wpw2, s2, b2)

    # (N, Ho2*Wo2, Cp) -> drop channel padding -> NCHW.
    out = out.reshape(N, Ho2, Wo2, Cp)[..., :Cout]
    return jnp.transpose(out, (0, 3, 1, 2)).astype(x_nchw.dtype)


# ---------------- deterministic parameter init (synthetic) ----------------
def init_params(key, in_c, out_c, K, eps=1e-3):
    keys = jax.random.split(key, 6)

    def bn_fold(k, c):
        kg, kb, km, kv = jax.random.split(k, 4)
        gamma = 1.0 + 0.1 * jax.random.normal(kg, (c,), jnp.float32)
        beta = 0.1 * jax.random.normal(kb, (c,), jnp.float32)
        mean = 0.1 * jax.random.normal(km, (c,), jnp.float32)
        var = 0.5 + jnp.abs(jax.random.normal(kv, (c,), jnp.float32))
        scale = gamma * jax.lax.rsqrt(var + eps)
        shift = beta - mean * scale
        return scale, shift

    dw1 = jax.random.normal(keys[0], (K, K, in_c), jnp.float32) / (K * K)
    pw1 = jax.random.normal(keys[1], (in_c, out_c), jnp.float32) / jnp.sqrt(float(in_c))
    s1, b1 = bn_fold(keys[2], out_c)
    dw2 = jax.random.normal(keys[3], (K, K, out_c), jnp.float32) / (K * K)
    pw2 = jax.random.normal(keys[4], (out_c, out_c), jnp.float32) / jnp.sqrt(float(out_c))
    s2, b2 = bn_fold(keys[5], out_c)
    return dict(dw1=dw1, pw1=pw1, scale1=s1, shift1=b1,
                dw2=dw2, pw2=pw2, scale2=s2, shift2=b2)


# ---------------- plain-JAX reference (for correctness check) -------------
def _ref_block(x_nhwc, wdw, wpw, scale, shift, stride, padding):
    x = jnp.maximum(x_nhwc, 0.0)
    y = jax.lax.conv_general_dilated(
        x, wdw[:, :, None, :],
        window_strides=(stride, stride),
        padding=((padding, padding), (padding, padding)),
        dimension_numbers=("NHWC", "HWIO", "NHWC"),
        feature_group_count=x.shape[-1],
        precision=jax.lax.Precision.HIGHEST)
    y = jnp.einsum("nhwc,co->nhwo", y, wpw,
                   precision=jax.lax.Precision.HIGHEST)
    return y * scale + shift


def reference_forward(x_nchw, params, *, stride, padding):
    x = jnp.transpose(x_nchw, (0, 2, 3, 1))
    x = _ref_block(x, params["dw1"], params["pw1"],
                   params["scale1"], params["shift1"], stride, padding)
    x = _ref_block(x, params["dw2"], params["pw2"],
                   params["scale2"], params["shift2"], 1, padding)
    return jnp.transpose(x, (0, 3, 1, 2))


if __name__ == "__main__":
    N, in_c, out_c = 2, 4, 8
    H = W = 16
    K, stride, padding = 3, 2, 1

    key = jax.random.PRNGKey(0)
    kx, kp = jax.random.split(key)
    x = jax.random.normal(kx, (N, in_c, H, W), jnp.float32)
    params = init_params(kp, in_c, out_c, K)

    out = branch_separables_stem(x, params, stride=stride, padding=padding)
    out = jax.block_until_ready(out)

    ref = reference_forward(x, params, stride=stride, padding=padding)
    assert out.shape == ref.shape, (out.shape, ref.shape)
    err = float(jnp.max(jnp.abs(out - ref)))
    # bf16 input / bf16 mid scratch / bf16 MXU operands (all with f32
    # accumulation and f32 VPU math) keep the error well below this bound.
    if not err < 3e-2:
        raise AssertionError(f"Pallas output mismatch vs reference: max abs err = {err}")

    print("KERNEL_OK")
</pallas_src>

<mosaic_0001>
module attributes {stable_mosaic.version = 11 : i64} {
  func.func @_fused_stem_kernel(%arg0: i32, %arg1: memref<1x9x2x9x8xbf16, #tpu.memory_space<vmem>>, %arg2: memref<3x2x8xf32, #tpu.memory_space<vmem>>, %arg3: memref<8x128xbf16, #tpu.memory_space<vmem>>, %arg4: memref<1x128xf32, #tpu.memory_space<vmem>>, %arg5: memref<1x128xf32, #tpu.memory_space<vmem>>, %arg6: memref<3x3x128xf32, #tpu.memory_space<vmem>>, %arg7: memref<128x128xbf16, #tpu.memory_space<vmem>>, %arg8: memref<1x128xf32, #tpu.memory_space<vmem>>, %arg9: memref<1x128xf32, #tpu.memory_space<vmem>>, %arg10: memref<1x64x128xf32, #tpu.memory_space<vmem>>, %arg11: memref<10x32x128xbf16, #tpu.memory_space<vmem>>) attributes {dimension_semantics = [#tpu.dimension_semantics<parallel>], iteration_bounds = array<i64: 2>, scalar_prefetch = 0 : i64, scratch_operands = 1 : i64, tpu.core_type = #tpu.core_type<tc>, window_params = [{transform_indices = @transform_0, window_bounds = array<i64: 1, 9, 2, 9, 8>}, {pipeline_mode = #tpu.pipeline_mode<synchronous>, transform_indices = @transform_1, window_bounds = array<i64: 3, 2, 8>}, {pipeline_mode = #tpu.pipeline_mode<synchronous>, transform_indices = @transform_2, window_bounds = array<i64: 8, 128>}, {pipeline_mode = #tpu.pipeline_mode<synchronous>, transform_indices = @transform_3, window_bounds = array<i64: 1, 128>}, {pipeline_mode = #tpu.pipeline_mode<synchronous>, transform_indices = @transform_4, window_bounds = array<i64: 1, 128>}, {pipeline_mode = #tpu.pipeline_mode<synchronous>, transform_indices = @transform_5, window_bounds = array<i64: 3, 3, 128>}, {pipeline_mode = #tpu.pipeline_mode<synchronous>, transform_indices = @transform_6, window_bounds = array<i64: 128, 128>}, {pipeline_mode = #tpu.pipeline_mode<synchronous>, transform_indices = @transform_7, window_bounds = array<i64: 1, 128>}, {pipeline_mode = #tpu.pipeline_mode<synchronous>, transform_indices = @transform_8, window_bounds = array<i64: 1, 128>}, {transform_indices = @transform_9, window_bounds = array<i64: 1, 64, 128>}]} {
    %c0 = arith.constant 0 : index
    %c0_0 = arith.constant 0 : index
    %c0_1 = arith.constant 0 : index
    %0 = vector.load %arg2[%c0, %c0_0, %c0_1] : memref<3x2x8xf32, #tpu.memory_space<vmem>>, vector<3x2x8xf32>
    %c0_2 = arith.constant 0 : index
    %c0_3 = arith.constant 0 : index
    %c0_4 = arith.constant 0 : index
    %1 = vector.load %arg6[%c0_2, %c0_3, %c0_4] : memref<3x3x128xf32, #tpu.memory_space<vmem>>, vector<3x3x128xf32>
    %c0_5 = arith.constant 0 : index
    %c0_6 = arith.constant 0 : index
    %2 = vector.load %arg4[%c0_5, %c0_6] : memref<1x128xf32, #tpu.memory_space<vmem>>, vector<1x128xf32>
    %3 = vector.shape_cast %2 : vector<1x128xf32> to vector<128xf32>
    %c0_7 = arith.constant 0 : index
    %c0_8 = arith.constant 0 : index
    %4 = vector.load %arg5[%c0_7, %c0_8] : memref<1x128xf32, #tpu.memory_space<vmem>>, vector<1x128xf32>
    %5 = vector.shape_cast %4 : vector<1x128xf32> to vector<128xf32>
    %c0_9 = arith.constant 0 : index
    %c0_10 = arith.constant 0 : index
    %6 = vector.load %arg8[%c0_9, %c0_10] : memref<1x128xf32, #tpu.memory_space<vmem>>, vector<1x128xf32>
    %7 = vector.shape_cast %6 : vector<1x128xf32> to vector<128xf32>
    %c0_11 = arith.constant 0 : index
    %c0_12 = arith.constant 0 : index
    %8 = vector.load %arg9[%c0_11, %c0_12] : memref<1x128xf32, #tpu.memory_space<vmem>>, vector<1x128xf32>
    %9 = vector.shape_cast %8 : vector<1x128xf32> to vector<128xf32>
    %cst = arith.constant 0.000000e+00 : bf16
    %10 = vector.broadcast %cst : bf16 to vector<1x32x128xbf16>
    %c0_13 = arith.constant 0 : index
    %c0_14 = arith.constant 0 : index
    %c0_15 = arith.constant 0 : index
    %11 = vector.load %arg11[%c0_13, %c0_14, %c0_15] : memref<10x32x128xbf16, #tpu.memory_space<vmem>>, vector<1x32x128xbf16>
    tpu.vector_store %arg11[%c0_13, %c0_14, %c0_15], %10 {strides = array<i32>} : memref<10x32x128xbf16, #tpu.memory_space<vmem>>, vector<1x32x128xbf16>,
    %cst_16 = arith.constant 0.000000e+00 : bf16
    %12 = vector.broadcast %cst_16 : bf16 to vector<1x32x128xbf16>
    %c9 = arith.constant 9 : index
    %c0_17 = arith.constant 0 : index
    %c0_18 = arith.constant 0 : index
    %13 = vector.load %arg11[%c9, %c0_17, %c0_18] : memref<10x32x128xbf16, #tpu.memory_space<vmem>>, vector<1x32x128xbf16>
    tpu.vector_store %arg11[%c9, %c0_17, %c0_18], %12 {strides = array<i32>} : memref<10x32x128xbf16, #tpu.memory_space<vmem>>, vector<1x32x128xbf16>,
    %cst_19 = arith.constant 0.000000e+00 : bf16
    %14 = vector.broadcast %cst_19 : bf16 to vector<8x16x128xbf16>
    %c1 = arith.constant 1 : index
    %c0_20 = arith.constant 0 : index
    %c0_21 = arith.constant 0 : index
    %15 = vector.load %arg11[%c1, %c0_20, %c0_21] : memref<10x32x128xbf16, #tpu.memory_space<vmem>>, vector<8x16x128xbf16>
    tpu.vector_store %arg11[%c1, %c0_20, %c0_21], %14 {strides = array<i32>} : memref<10x32x128xbf16, #tpu.memory_space<vmem>>, vector<8x16x128xbf16>,
    %cst_22 = arith.constant 0.000000e+00 : bf16
    %16 = vector.broadcast %cst_22 : bf16 to vector<8x8x128xbf16>
    %c1_23 = arith.constant 1 : index
    %c24 = arith.constant 24 : index
    %c0_24 = arith.constant 0 : index
    %17 = vector.load %arg11[%c1_23, %c24, %c0_24] : memref<10x32x128xbf16, #tpu.memory_space<vmem>>, vector<8x8x128xbf16>
    tpu.vector_store %arg11[%c1_23, %c24, %c0_24], %16 {strides = array<i32>} : memref<10x32x128xbf16, #tpu.memory_space<vmem>>, vector<8x8x128xbf16>,
    %cst_25 = arith.constant 0.000000e+00 : f32
    %18 = vector.broadcast %cst_25 : f32 to vector<8x8x8xf32>
    %c0_26 = arith.constant 0 : index
    %c0_27 = arith.constant 0 : index
    %c0_28 = arith.constant 0 : index
    %c0_29 = arith.constant 0 : index
    %c0_30 = arith.constant 0 : index
    %19 = vector.load %arg1[%c0_26, %c0_27, %c0_28, %c0_29, %c0_30] : memref<1x9x2x9x8xbf16, #tpu.memory_space<vmem>>, vector<1x8x1x9x8xbf16>
    %20 = vector.shape_cast %19 : vector<1x8x1x9x8xbf16> to vector<8x9x8xbf16>
    %21 = arith.extf %20 : vector<8x9x8xbf16> to vector<8x9x8xf32>
    %cst_31 = arith.constant 0.000000e+00 : f32
    %22 = vector.broadcast %cst_31 : f32 to vector<8x9x8xf32>
    %23 = arith.maximumf %21, %22 : vector<8x9x8xf32>
    %24 = vector.extract_strided_slice %23 {offsets = [0, 0, 0], sizes = [8, 8, 8], strides = [1, 1, 1]} : vector<8x9x8xf32> to vector<8x8x8xf32>
    %25 = vector.extract_strided_slice %0 {offsets = [0, 0, 0], sizes = [1, 1, 8], strides = [1, 1, 1]} : vector<3x2x8xf32> to vector<1x1x8xf32>
    %26 = vector.shape_cast %25 : vector<1x1x8xf32> to vector<8xf32>
    %27 = vector.shape_cast %26 : vector<8xf32> to vector<1x1x8xf32>
    %28 = vector.broadcast %27 : vector<1x1x8xf32> to vector<8x8x8xf32>
    %29 = arith.mulf %24, %28 : vector<8x8x8xf32>
    %30 = arith.addf %18, %29 : vector<8x8x8xf32>
    %31 = vector.extract_strided_slice %23 {offsets = [0, 1, 0], sizes = [8, 8, 8], strides = [1, 1, 1]} : vector<8x9x8xf32> to vector<8x8x8xf32>
    %32 = vector.extract_strided_slice %0 {offsets = [0, 1, 0], sizes = [1, 1, 8], strides = [1, 1, 1]} : vector<3x2x8xf32> to vector<1x1x8xf32>
    %33 = vector.shape_cast %32 : vector<1x1x8xf32> to vector<8xf32>
    %34 = vector.shape_cast %33 : vector<8xf32> to vector<1x1x8xf32>
    %35 = vector.broadcast %34 : vector<1x1x8xf32> to vector<8x8x8xf32>
    %36 = arith.mulf %31, %35 : vector<8x8x8xf32>
    %37 = arith.addf %30, %36 : vector<8x8x8xf32>
    %c0_32 = arith.constant 0 : index
    %c0_33 = arith.constant 0 : index
    %c1_34 = arith.constant 1 : index
    %c0_35 = arith.constant 0 : index
    %c0_36 = arith.constant 0 : index
    %38 = vector.load %arg1[%c0_32, %c0_33, %c1_34, %c0_35, %c0_36] : memref<1x9x2x9x8xbf16, #tpu.memory_space<vmem>>, vector<1x8x1x9x8xbf16>
    %39 = vector.shape_cast %38 : vector<1x8x1x9x8xbf16> to vector<8x9x8xbf16>
    %40 = arith.extf %39 : vector<8x9x8xbf16> to vector<8x9x8xf32>
    %cst_37 = arith.constant 0.000000e+00 : f32
    %41 = vector.broadcast %cst_37 : f32 to vector<8x9x8xf32>
    %42 = arith.maximumf %40, %41 : vector<8x9x8xf32>
    %43 = vector.extract_strided_slice %42 {offsets = [0, 0, 0], sizes = [8, 8, 8], strides = [1, 1, 1]} : vector<8x9x8xf32> to vector<8x8x8xf32>
    %44 = vector.extract_strided_slice %0 {offsets = [1, 0, 0], sizes = [1, 1, 8], strides = [1, 1, 1]} : vector<3x2x8xf32> to vector<1x1x8xf32>
    %45 = vector.shape_cast %44 : vector<1x1x8xf32> to vector<8xf32>
    %46 = vector.shape_cast %45 : vector<8xf32> to vector<1x1x8xf32>
    %47 = vector.broadcast %46 : vector<1x1x8xf32> to vector<8x8x8xf32>
    %48 = arith.mulf %43, %47 : vector<8x8x8xf32>
    %49 = arith.addf %37, %48 : vector<8x8x8xf32>
    %50 = vector.extract_strided_slice %42 {offsets = [0, 1, 0], sizes = [8, 8, 8], strides = [1, 1, 1]} : vector<8x9x8xf32> to vector<8x8x8xf32>
    %51 = vector.extract_strided_slice %0 {offsets = [1, 1, 0], sizes = [1, 1, 8], strides = [1, 1, 1]} : vector<3x2x8xf32> to vector<1x1x8xf32>
    %52 = vector.shape_cast %51 : vector<1x1x8xf32> to vector<8xf32>
    %53 = vector.shape_cast %52 : vector<8xf32> to vector<1x1x8xf32>
    %54 = vector.broadcast %53 : vector<1x1x8xf32> to vector<8x8x8xf32>
    %55 = arith.mulf %50, %54 : vector<8x8x8xf32>
    %56 = arith.addf %49, %55 : vector<8x8x8xf32>
    %c0_38 = arith.constant 0 : index
    %c1_39 = arith.constant 1 : index
    %c0_40 = arith.constant 0 : index
    %c0_41 = arith.constant 0 : index
    %c0_42 = arith.constant 0 : index
    %57 = vector.load %arg1[%c0_38, %c1_39, %c0_40, %c0_41, %c0_42] : memref<1x9x2x9x8xbf16, #tpu.memory_space<vmem>>, vector<1x8x1x9x8xbf16>
    %58 = vector.shape_cast %57 : vector<1x8x1x9x8xbf16> to vector<8x9x8xbf16>
    %59 = arith.extf %58 : vector<8x9x8xbf16> to vector<8x9x8xf32>
    %cst_43 = arith.constant 0.000000e+00 : f32
    %60 = vector.broadcast %cst_43 : f32 to vector<8x9x8xf32>
    %61 = arith.maximumf %59, %60 : vector<8x9x8xf32>
    %62 = vector.extract_strided_slice %61 {offsets = [0, 0, 0], sizes = [8, 8, 8], strides = [1, 1, 1]} : vector<8x9x8xf32> to vector<8x8x8xf32>
    %63 = vector.extract_strided_slice %0 {offsets = [2, 0, 0], sizes = [1, 1, 8], strides = [1, 1, 1]} : vector<3x2x8xf32> to vector<1x1x8xf32>
    %64 = vector.shape_cast %63 : vector<1x1x8xf32> to vector<8xf32>
    %65 = vector.shape_cast %64 : vector<8xf32> to vector<1x1x8xf32>
    %66 = vector.broadcast %65 : vector<1x1x8xf32> to vector<8x8x8xf32>
    %67 = arith.mulf %62, %66 : vector<8x8x8xf32>
    %68 = arith.addf %56, %67 : vector<8x8x8xf32>
    %69 = vector.extract_strided_slice %61 {offsets = [0, 1, 0], sizes = [8, 8, 8], strides = [1, 1, 1]} : vector<8x9x8xf32> to vector<8x8x8xf32>
    %70 = vector.extract_strided_slice %0 {offsets = [2, 1, 0], sizes = [1, 1, 8], strides = [1, 1, 1]} : vector<3x2x8xf32> to vector<1x1x8xf32>
    %71 = vector.shape_cast %70 : vector<1x1x8xf32> to vector<8xf32>
    %72 = vector.shape_cast %71 : vector<8xf32> to vector<1x1x8xf32>
    %73 = vector.broadcast %72 : vector<1x1x8xf32> to vector<8x8x8xf32>
    %74 = arith.mulf %69, %73 : vector<8x8x8xf32>
    %75 = arith.addf %68, %74 : vector<8x8x8xf32>
    %76 = vector.shape_cast %75 : vector<8x8x8xf32> to vector<64x8xf32>
    %77 = arith.truncf %76 : vector<64x8xf32> to vector<64x8xbf16>
    %c0_44 = arith.constant 0 : index
    %c0_45 = arith.constant 0 : index
    %78 = vector.load %arg3[%c0_44, %c0_45] : memref<8x128xbf16, #tpu.memory_space<vmem>>, vector<8x128xbf16>
    %cst_46 = arith.constant dense<0.000000e+00> : vector<64x128xf32>
    %79 = tpu.matmul %77, %78, %cst_46 {dimension_numbers = #tpu.dot_dimension_numbers<[1], [0], [0], [1], [0, 0, 1, 1], [], []>} : vector<64x8xbf16>, vector<8x128xbf16>, vector<64x128xf32> -> vector<64x128xf32>
    %80 = vector.shape_cast %3 : vector<128xf32> to vector<1x128xf32>
    %81 = vector.broadcast %80 : vector<1x128xf32> to vector<64x128xf32>
    %82 = arith.mulf %79, %81 : vector<64x128xf32>
    %83 = vector.shape_cast %5 : vector<128xf32> to vector<1x128xf32>
    %84 = vector.broadcast %83 : vector<1x128xf32> to vector<64x128xf32>
    %85 = arith.addf %82, %84 : vector<64x128xf32>
    %cst_47 = arith.constant 0.000000e+00 : f32
    %86 = vector.broadcast %cst_47 : f32 to vector<64x128xf32>
    %87 = arith.maximumf %85, %86 : vector<64x128xf32>
    %88 = vector.shape_cast %87 : vector<64x128xf32> to vector<8x8x128xf32>
    %89 = arith.truncf %88 : vector<8x8x128xf32> to vector<8x8x128xbf16>
    %c1_48 = arith.constant 1 : index
    %c16 = arith.constant 16 : index
    %c0_49 = arith.constant 0 : index
    %90 = vector.load %arg11[%c1_48, %c16, %c0_49] : memref<10x32x128xbf16, #tpu.memory_space<vmem>>, vector<8x8x128xbf16>
    tpu.vector_store %arg11[%c1_48, %c16, %c0_49], %89 {strides = array<i32>} : memref<10x32x128xbf16, #tpu.memory_space<vmem>>, vector<8x8x128xbf16>,
    %cst_50 = arith.constant 0.000000e+00 : f32
    %91 = vector.broadcast %cst_50 : f32 to vector<8x8x128xf32>
    %c0_51 = arith.constant 0 : index
    %c15 = arith.constant 15 : index
    %c0_52 = arith.constant 0 : index
    %92 = vector.load %arg11[%c0_51, %c15, %c0_52] : memref<10x32x128xbf16, #tpu.memory_space<vmem>>, vector<8x8x128xbf16>
    %93 = arith.extf %92 : vector<8x8x128xbf16> to vector<8x8x128xf32>
    %94 = vector.extract_strided_slice %1 {offsets = [0, 0, 0], sizes = [1, 1, 128], strides = [1, 1, 1]} : vector<3x3x128xf32> to vector<1x1x128xf32>
    %95 = vector.shape_cast %94 : vector<1x1x128xf32> to vector<128xf32>
    %96 = vector.shape_cast %95 : vector<128xf32> to vector<1x1x128xf32>
    %97 = vector.broadcast %96 : vector<1x1x128xf32> to vector<8x8x128xf32>
    %98 = arith.mulf %93, %97 : vector<8x8x128xf32>
    %99 = arith.addf %91, %98 : vector<8x8x128xf32>
    %c0_53 = arith.constant 0 : index
    %c16_54 = arith.constant 16 : index
    %c0_55 = arith.constant 0 : index
    %100 = vector.load %arg11[%c0_53, %c16_54, %c0_55] : memref<10x32x128xbf16, #tpu.memory_space<vmem>>, vector<8x8x128xbf16>
    %101 = arith.extf %100 : vector<8x8x128xbf16> to vector<8x8x128xf32>
    %102 = vector.extract_strided_slice %1 {offsets = [0, 1, 0], sizes = [1, 1, 128], strides = [1, 1, 1]} : vector<3x3x128xf32> to vector<1x1x128xf32>
    %103 = vector.shape_cast %102 : vector<1x1x128xf32> to vector<128xf32>
    %104 = vector.shape_cast %103 : vector<128xf32> to vector<1x1x128xf32>
    %105 = vector.broadcast %104 : vector<1x1x128xf32> to vector<8x8x128xf32>
    %106 = arith.mulf %101, %105 : vector<8x8x128xf32>
    %107 = arith.addf %99, %106 : vector<8x8x128xf32>
    %c0_56 = arith.constant 0 : index
    %c17 = arith.constant 17 : index
    %c0_57 = arith.constant 0 : index
    %108 = vector.load %arg11[%c0_56, %c17, %c0_57] : memref<10x32x128xbf16, #tpu.memory_space<vmem>>, vector<8x8x128xbf16>
    %109 = arith.extf %108 : vector<8x8x128xbf16> to vector<8x8x128xf32>
    %110 = vector.extract_strided_slice %1 {offsets = [0, 2, 0], sizes = [1, 1, 128], strides = [1, 1, 1]} : vector<3x3x128xf32> to vector<1x1x128xf32>
    %111 = vector.shape_cast %110 : vector<1x1x128xf32> to vector<128xf32>
    %112 = vector.shape_cast %111 : vector<128xf32> to vector<1x1x128xf32>
    %113 = vector.broadcast %112 : vector<1x1x128xf32> to vector<8x8x128xf32>
    %114 = arith.mulf %109, %113 : vector<8x8x128xf32>
    %115 = arith.addf %107, %114 : vector<8x8x128xf32>
    %c1_58 = arith.constant 1 : index
    %c15_59 = arith.constant 15 : index
    %c0_60 = arith.constant 0 : index
    %116 = vector.load %arg11[%c1_58, %c15_59, %c0_60] : memref<10x32x128xbf16, #tpu.memory_space<vmem>>, vector<8x8x128xbf16>
    %117 = arith.extf %116 : vector<8x8x128xbf16> to vector<8x8x128xf32>
    %118 = vector.extract_strided_slice %1 {offsets = [1, 0, 0], sizes = [1, 1, 128], strides = [1, 1, 1]} : vector<3x3x128xf32> to vector<1x1x128xf32>
    %119 = vector.shape_cast %118 : vector<1x1x128xf32> to vector<128xf32>
    %120 = vector.shape_cast %119 : vector<128xf32> to vector<1x1x128xf32>
    %121 = vector.broadcast %120 : vector<1x1x128xf32> to vector<8x8x128xf32>
    %122 = arith.mulf %117, %121 : vector<8x8x128xf32>
    %123 = arith.addf %115, %122 : vector<8x8x128xf32>
    %c1_61 = arith.constant 1 : index
    %c16_62 = arith.constant 16 : index
    %c0_63 = arith.constant 0 : index
    %124 = vector.load %arg11[%c1_61, %c16_62, %c0_63] : memref<10x32x128xbf16, #tpu.memory_space<vmem>>, vector<8x8x128xbf16>
    %125 = arith.extf %124 : vector<8x8x128xbf16> to vector<8x8x128xf32>
    %126 = vector.extract_strided_slice %1 {offsets = [1, 1, 0], sizes = [1, 1, 128], strides = [1, 1, 1]} : vector<3x3x128xf32> to vector<1x1x128xf32>
    %127 = vector.shape_cast %126 : vector<1x1x128xf32> to vector<128xf32>
    %128 = vector.shape_cast %127 : vector<128xf32> to vector<1x1x128xf32>
    %129 = vector.broadcast %128 : vector<1x1x128xf32> to vector<8x8x128xf32>
    %130 = arith.mulf %125, %129 : vector<8x8x128xf32>
    %131 = arith.addf %123, %130 : vector<8x8x128xf32>
    %c1_64 = arith.constant 1 : index
    %c17_65 = arith.constant 17 : index
    %c0_66 = arith.constant 0 : index
    %132 = vector.load %arg11[%c1_64, %c17_65, %c0_66] : memref<10x32x128xbf16, #tpu.memory_space<vmem>>, vector<8x8x128xbf16>
    %133 = arith.extf %132 : vector<8x8x128xbf16> to vector<8x8x128xf32>
    %134 = vector.extract_strided_slice %1 {offsets = [1, 2, 0], sizes = [1, 1, 128], strides = [1, 1, 1]} : vector<3x3x128xf32> to vector<1x1x128xf32>
    %135 = vector.shape_cast %134 : vector<1x1x128xf32> to vector<128xf32>
    %136 = vector.shape_cast %135 : vector<128xf32> to vector<1x1x128xf32>
    %137 = vector.broadcast %136 : vector<1x1x128xf32> to vector<8x8x128xf32>
    %138 = arith.mulf %133, %137 : vector<8x8x128xf32>
    %139 = arith.addf %131, %138 : vector<8x8x128xf32>
    %c2 = arith.constant 2 : index
    %c15_67 = arith.constant 15 : index
    %c0_68 = arith.constant 0 : index
    %140 = vector.load %arg11[%c2, %c15_67, %c0_68] : memref<10x32x128xbf16, #tpu.memory_space<vmem>>, vector<8x8x128xbf16>
    %141 = arith.extf %140 : vector<8x8x128xbf16> to vector<8x8x128xf32>
    %142 = vector.extract_strided_slice %1 {offsets = [2, 0, 0], sizes = [1, 1, 128], strides = [1, 1, 1]} : vector<3x3x128xf32> to vector<1x1x128xf32>
    %143 = vector.shape_cast %142 : vector<1x1x128xf32> to vector<128xf32>
    %144 = vector.shape_cast %143 : vector<128xf32> to vector<1x1x128xf32>
    %145 = vector.broadcast %144 : vector<1x1x128xf32> to vector<8x8x128xf32>
    %146 = arith.mulf %141, %145 : vector<8x8x128xf32>
    %147 = arith.addf %139, %146 : vector<8x8x128xf32>
    %c2_69 = arith.constant 2 : index
    %c16_70 = arith.constant 16 : index
    %c0_71 = arith.constant 0 : index
    %148 = vector.load %arg11[%c2_69, %c16_70, %c0_71] : memref<10x32x128xbf16, #tpu.memory_space<vmem>>, vector<8x8x128xbf16>
    %149 = arith.extf %148 : vector<8x8x128xbf16> to vector<8x8x128xf32>
    %150 = vector.extract_strided_slice %1 {offsets = [2, 1, 0], sizes = [1, 1, 128], strides = [1, 1, 1]} : vector<3x3x128xf32> to vector<1x1x128xf32>
    %151 = vector.shape_cast %150 : vector<1x1x128xf32> to vector<128xf32>
    %152 = vector.shape_cast %151 : vector<128xf32> to vector<1x1x128xf32>
    %153 = vector.broadcast %152 : vector<1x1x128xf32> to vector<8x8x128xf32>
    %154 = arith.mulf %149, %153 : vector<8x8x128xf32>
    %155 = arith.addf %147, %154 : vector<8x8x128xf32>
    %c2_72 = arith.constant 2 : index
    %c17_73 = arith.constant 17 : index
    %c0_74 = arith.constant 0 : index
    %156 = vector.load %arg11[%c2_72, %c17_73, %c0_74] : memref<10x32x128xbf16, #tpu.memory_space<vmem>>, vector<8x8x128xbf16>
    %157 = arith.extf %156 : vector<8x8x128xbf16> to vector<8x8x128xf32>
    %158 = vector.extract_strided_slice %1 {offsets = [2, 2, 0], sizes = [1, 1, 128], strides = [1, 1, 1]} : vector<3x3x128xf32> to vector<1x1x128xf32>
    %159 = vector.shape_cast %158 : vector<1x1x128xf32> to vector<128xf32>
    %160 = vector.shape_cast %159 : vector<128xf32> to vector<1x1x128xf32>
    %161 = vector.broadcast %160 : vector<1x1x128xf32> to vector<8x8x128xf32>
    %162 = arith.mulf %157, %161 : vector<8x8x128xf32>
    %163 = arith.addf %155, %162 : vector<8x8x128xf32>
    %164 = vector.shape_cast %163 : vector<8x8x128xf32> to vector<64x128xf32>
    %165 = arith.truncf %164 : vector<64x128xf32> to vector<64x128xbf16>
    %c0_75 = arith.constant 0 : index
    %c0_76 = arith.constant 0 : index
    %166 = vector.load %arg7[%c0_75, %c0_76] : memref<128x128xbf16, #tpu.memory_space<vmem>>, vector<128x128xbf16>
    %cst_77 = arith.constant dense<0.000000e+00> : vector<64x128xf32>
    %167 = tpu.matmul %165, %166, %cst_77 {dimension_numbers = #tpu.dot_dimension_numbers<[1], [0], [0], [1], [0, 0, 1, 1], [], []>} : vector<64x128xbf16>, vector<128x128xbf16>, vector<64x128xf32> -> vector<64x128xf32>
    %168 = vector.shape_cast %7 : vector<128xf32> to vector<1x128xf32>
    %169 = vector.broadcast %168 : vector<1x128xf32> to vector<64x128xf32>
    %170 = arith.mulf %167, %169 : vector<64x128xf32>
    %171 = vector.shape_cast %9 : vector<128xf32> to vector<1x128xf32>
    %172 = vector.broadcast %171 : vector<1x128xf32> to vector<64x128xf32>
    %173 = arith.addf %170, %172 : vector<64x128xf32>
    %c0_78 = arith.constant 0 : index
    %c0_79 = arith.constant 0 : index
    %c0_80 = arith.constant 0 : index
    %174 = vector.load %arg10[%c0_78, %c0_79, %c0_80] : memref<1x64x128xf32, #tpu.memory_space<vmem>>, vector<1x64x128xf32>
    %175 = vector.shape_cast %174 : vector<1x64x128xf32> to vector<64x128xf32>
    %176 = vector.shape_cast %173 : vector<64x128xf32> to vector<1x64x128xf32>
    tpu.vector_store %arg10[%c0_78, %c0_79, %c0_80], %176 {strides = array<i32>} : memref<1x64x128xf32, #tpu.memory_space<vmem>>, vector<1x64x128xf32>,
    return
  }
  func.func @transform_0(%arg0: i32) -> (i32, i32, i32, i32, i32) {
    %c0_i32 = arith.constant 0 : i32
    %c0_i32_0 = arith.constant 0 : i32
    %c0_i32_1 = arith.constant 0 : i32
    %c0_i32_2 = arith.constant 0 : i32
    %c0_i32_3 = arith.constant 0 : i32
    return %arg0, %c0_i32, %c0_i32_0, %c0_i32_1, %c0_i32_2 : i32, i32, i32, i32, i32
  }
  func.func @transform_1(%arg0: i32) -> (i32, i32, i32) {
    %c0_i32 = arith.constant 0 : i32
    %c0_i32_0 = arith.constant 0 : i32
    %c0_i32_1 = arith.constant 0 : i32
    %c0_i32_2 = arith.constant 0 : i32
    return %c0_i32, %c0_i32_0, %c0_i32_1 : i32, i32, i32
  }
  func.func @transform_2(%arg0: i32) -> (i32, i32) {
    %c0_i32 = arith.constant 0 : i32
    %c0_i32_0 = arith.constant 0 : i32
    %c0_i32_1 = arith.constant 0 : i32
    return %c0_i32, %c0_i32_0 : i32, i32
  }
  func.func @transform_3(%arg0: i32) -> (i32, i32) {
    %c0_i32 = arith.constant 0 : i32
    %c0_i32_0 = arith.constant 0 : i32
    %c0_i32_1 = arith.constant 0 : i32
    return %c0_i32, %c0_i32_0 : i32, i32
  }
  func.func @transform_4(%arg0: i32) -> (i32, i32) {
    %c0_i32 = arith.constant 0 : i32
    %c0_i32_0 = arith.constant 0 : i32
    %c0_i32_1 = arith.constant 0 : i32
    return %c0_i32, %c0_i32_0 : i32, i32
  }
  func.func @transform_5(%arg0: i32) -> (i32, i32, i32) {
    %c0_i32 = arith.constant 0 : i32
    %c0_i32_0 = arith.constant 0 : i32
    %c0_i32_1 = arith.constant 0 : i32
    %c0_i32_2 = arith.constant 0 : i32
    return %c0_i32, %c0_i32_0, %c0_i32_1 : i32, i32, i32
  }
  func.func @transform_6(%arg0: i32) -> (i32, i32) {
    %c0_i32 = arith.constant 0 : i32
    %c0_i32_0 = arith.constant 0 : i32
    %c0_i32_1 = arith.constant 0 : i32
    return %c0_i32, %c0_i32_0 : i32, i32
  }
  func.func @transform_7(%arg0: i32) -> (i32, i32) {
    %c0_i32 = arith.constant 0 : i32
    %c0_i32_0 = arith.constant 0 : i32
    %c0_i32_1 = arith.constant 0 : i32
    return %c0_i32, %c0_i32_0 : i32, i32
  }
  func.func @transform_8(%arg0: i32) -> (i32, i32) {
    %c0_i32 = arith.constant 0 : i32
    %c0_i32_0 = arith.constant 0 : i32
    %c0_i32_1 = arith.constant 0 : i32
    return %c0_i32, %c0_i32_0 : i32, i32
  }
  func.func @transform_9(%arg0: i32) -> (i32, i32, i32) {
    %c0_i32 = arith.constant 0 : i32
    %c0_i32_0 = arith.constant 0 : i32
    %c0_i32_1 = arith.constant 0 : i32
    return %arg0, %c0_i32, %c0_i32_0 : i32, i32, i32
  }
}

</mosaic_0001>

<bundles_post_ra>
// kernel: tpu_custom_call.1
= control target key start
LH: loop header
LB: loop body
LE: loop exit
PB: predicated region body
PF: predicated region fallthrough
CT: control target
= control target key end

     0   :  { %14 = vsyncpa [#allocation4], 0  ;;  %s3123_s0 = inlined_call_operand.vmem [shape: bf16[2,9,2,9,8], index: 0, kind: input, shape index: {}]   ;;  %s3124_s1 = inlined_call_operand.vmem [shape: f32[3,2,8], index: 1, kind: input, shape index: {}]   ;;  %s3125_s2 = inlined_call_operand.vmem [shape: bf16[8,128], index: 2, kind: input, shape index: {}]   ;;  %s3126_s3 = inlined_call_operand.vmem [shape: f32[1,128], index: 3, kind: input, shape index: {}]   ;;  %s3127_s4 = inlined_call_operand.vmem [shape: f32[1,128], index: 4, kind: input, shape index: {}]   ;;  %s3128_s5 = inlined_call_operand.vmem [shape: f32[3,3,128], index: 5, kind: input, shape index: {}]   ;;  %s3129_s6 = inlined_call_operand.vmem [shape: bf16[128,128], index: 6, kind: input, shape index: {}]   ;;  %s3130_s7 = inlined_call_operand.vmem [shape: f32[1,128], index: 7, kind: input, shape index: {}]   ;;  %s3131_s8 = inlined_call_operand.vmem [shape: f32[1,128], index: 8, kind: input, shape index: {}]   ;;  %s3132_s9 = inlined_call_operand.hbm [shape: f32[2,64,128], index: 9, kind: output, shape index: {}]  }
   0x1   :  { %16 = vsyncpa [#allocation4 + $0x1], 0  ;;  %s2408_s30 = smov 0   ;;  %s2410_s10 = smov 0  }
   0x2   :  { %s2412_s11 = smov 0   ;;  %s2414_s12 = smov 0  }
   0x3 LB: > { %s2429_s13 = sadd.s32 4294967295, %s2352_s12   ;;  %s2111_s14 = sadd.s32 4294967294, %s2352_s12   ;;  %s2352_s12 = sphi %s2414_s12, %s3171_s12   ;;  %s2348_s11 = sphi %s2412_s11, %s3170_s11   ;;  %s2344_s10 = sphi %s2410_s10, %s3169_s10   ;;  %s2340_s30 = sphi %s2408_s30, %s3168_s30  }
   0x4   : > { %s2433_s15 = sadd.s32 1, %s2352_s12   ;;  %s223_s16 = sadd.s32 1, %s2348_s11 }
   0x5   : > { %s220_s17 = ssub.s32 %s2352_s12, %s2433_s15  ;;  %p233_p0 = scmp.ne.s32.totalorder %s2348_s11, %s2344_s10 }
   0x6   : > { %p221_p1 = scmp.eq.s32.totalorder %s220_s17, 0  ;;  %p234_p2 = scmp.eq.s32.totalorder %s2429_s13, 1 }
   0x7   : > { %p239_p3 = scmp.ne.s32.totalorder %s2344_s10, %s2340_s30  ;;  %p240_p4 = scmp.eq.s32.totalorder %s2111_s14, 1 }
   0x8   : > { %s2444_s18 = scalar_select %p221_p1, %s2348_s11, %s223_s16  }
   0x9   : > { %p2446_p5 = por %p234_p2, %p233_p0  ;;  %p2450_p6 = por %p240_p4, %p239_p3 }
   0xa   : > { %p2114_p7 = scmp.ge.s32.totalorder %s2352_s12, 1  ;;  %p290_p8 = scmp.lt.s32.totalorder %s2352_s12, 3 }
   0xc   : > { %p291_p9 = pnand %p2114_p7, %p290_p8 }
   0xe   : > { %294 = sbr.rel (%p291_p9) target bundleno = 682 (0x2aa), region = 56 }
  0x15   : > { %v803_v0 = vld [vmem:[%s3125_s2] sm:$0xf]  ;;  %vm817_vm0 = vcmask 1043456   ;;  %p326_p10 = scmp.lt.s32.totalorder %s2429_s13, 1  ;;  %v412_v1 = vlaneseq  ;;  %v334_v6 = vld [vmem:[%s3124_s1 + $0x4] sm:$0x3] }
  0x16   : > { %2238 = vmatprep.subr.msk.bf16.mxu0 %vm817_vm0, %v803_v0  ;;  %v819_v2 = vsel %vm817_vm0, %v803_v0, 0  ;;  %v332_v3 = vld [vmem:[%s3124_s1] sm:$0x3]  ;;  %v333_v4 = vld [vmem:[%s3124_s1 + $0x2] sm:$0x3]  ;;  %vm468_vm1 = vcmask 1046528  }
  0x17   : > { %2189 = vmatpush3.bf16.msra.mxu0 %v819_v2  ;;  %s327_s23 = scalar_select %p326_p10, %s2429_s13, 1  ;;  %v2469_v5 = vshrl.u32 %v412_v1, 7  ;;  %vm804_vm2 = vcmask 64512   ;;  %vm1175_vm3 = vcmask 1045504   ;;  %vm1833_vm4 = vcmask 1040384  }
  0x18   : > { %s323_s24 = sand.u32 1, %s2344_s10   ;;  %s2170_s16 = sshll.u32 %s2429_s13, 10 }
  0x19   : > { %s2239_s14 = smul.u32 144, %s327_s23  ;;  %v2475_v7 = vsub.s32 0, %v2469_v5  ;;  %v2478_v8 = vsub.s32 1, %v2469_v5  ;;  %s2115_s27 = sshll.u32 %s323_s24, 6 }
  0x1a   : > { %s3076_s23 = scalar_lea.hbm %s3132_s9, %s2170_s16  ;;  %s3082_s13 = scalar_lea.sflag [#allocation4], %s323_s24 }
  0x1b   : > { %s2483_s21 = scalar_lea.vmem %s3123_s0, %s2239_s14  ;;  %v2486_v9 = vrot.slane %v332_v3, %v2475_v7  ;;  %v2489_v10 = vrot.slane %v332_v3, %v2478_v8  ;;  %v2495_v14 = vrot.slane %v333_v4, %v2475_v7  ;;  %v2498_v15 = vrot.slane %v333_v4, %v2478_v8  ;;  %s325_s14 = scalar_lea.vmem [#allocation3], %s2115_s27 }
  0x1c   : > { %v364_v11 = vld [vmem:[%s2483_s21] ss:$16 sps:$4 sm:$0xff]   ;;  %v365_v12 = vld [vmem:[%s2483_s21 + $0x4] sm:$0x1]  ;;  %v367_v13 = vld [vmem:[%s2483_s21 + $0x14] sm:$0x1]  ;;  %v2501_v16 = vrot.slane %v334_v6, %v2475_v7  ;;  %v2504_v17 = vrot.slane %v334_v6, %v2478_v8 }
  0x1d   : > { %v380_v18 = vunpack.c.l.bf16 %v364_v11  ;;  %v381_v19 = vunpack.c.l.bf16 %v365_v12  ;;  %v382_v20 = vunpack.c.h.bf16 %v364_v11  ;;  %v383_v21 = vunpack.c.l.bf16 %v367_v13  ;;  %v2117_v22 = vld [vmem:[%s2483_s21 + $0x8] ss:$16 sps:$4 sm:$0xff]   ;;  %v2118_v23 = vld [vmem:[%s2483_s21 + $0xc] sm:$0x1]  ;;  %v2120_v24 = vld [vmem:[%s2483_s21 + $0x1c] sm:$0x1] }
  0x1e   : > { %v526_v25 = vunpack.c.l.bf16 %v2117_v22  ;;  %v527_v26 = vunpack.c.l.bf16 %v2118_v23  ;;  %v528_v27 = vunpack.c.h.bf16 %v2117_v22  ;;  %v529_v28 = vunpack.c.l.bf16 %v2120_v24  ;;  %v2133_v45 = vld [vmem:[%s2483_s21 + $0x10] ss:$16 sps:$4 sm:$0xff]   ;;  %v2134_v54 = vld [vmem:[%s2483_s21 + $0x14] sm:$0x1]  ;;  %v2136_v58 = vld [vmem:[%s2483_s21 + $0x24] sm:$0x1] }
  0x1f   : > { %v396_v29 = vmax.f32 %v380_v18, 0.0  ;;  %v397_v30 = vmax.f32 %v381_v19, 0.0  ;;  %v398_v31 = vmax.f32 %v382_v20, 0.0  ;;  %v399_v32 = vmax.f32 %v383_v21, 0.0  ;;  %v368_v0 = vld [vmem:[%s2483_s21 + $0x20] ss:$16 sps:$4 sm:$0xff]  }
  0x20   : > { %v542_v33 = vmax.f32 %v526_v25, 0.0  ;;  %v543_v34 = vmax.f32 %v527_v26, 0.0  ;;  %v544_v35 = vmax.f32 %v528_v27, 0.0  ;;  %v545_v36 = vmax.f32 %v529_v28, 0.0  ;;  %v369_v21 = vld [vmem:[%s2483_s21 + $0x24] sm:$0x1] }
  0x21   : > { %v416_v37 = vmul.f32 %v2486_v9, %v396_v29  ;;  %v417_v38 = vmul.f32 %v2486_v9, %v398_v31  ;;  %v436_v39 = vmul.f32 %v2489_v10, %v396_v29  ;;  %v437_v40 = vmul.f32 %v2489_v10, %v397_v30  ;;  %v371_v27 = vld [vmem:[%s2483_s21 + $0x34] sm:$0x1]  ;;  %s2049_s17 = sshll.u32 %s325_s14, 4  ;;  %s2355_s26 = smov [#allocation3]   ;;  %s3078_s17 = int_to_ptr.vmem [resolvable:$true] %s2049_s17 }
  0x22   : > { %v438_v41 = vmul.f32 %v2489_v10, %v398_v31  ;;  %v439_v42 = vmul.f32 %v2489_v10, %v399_v32  ;;  %v562_v43 = vmul.f32 %v2495_v14, %v542_v33  ;;  %v563_v44 = vmul.f32 %v2495_v14, %v544_v35  ;;  %v2121_v32 = vld [vmem:[%s2483_s21 + $0x28] ss:$16 sps:$4 sm:$0xff]   ;;  %s2290_s25 = scalar_lea.vmem %s3078_s17, 1024  ;;  %s2294_s27 = sshll.u32 %s2355_s26, 4  ;;  %s2295_s27 = int_to_ptr.vmem [resolvable:$false] %s2294_s27 }
  0x23   : > { %v469_v46 = vrot.slane %v436_v39, 1  ;;  %v470_v47 = vrot.slane %v437_v40, 1  ;;  %v582_v48 = vmul.f32 %v2498_v15, %v542_v33  ;;  %v583_v49 = vmul.f32 %v2498_v15, %v543_v34  ;;  %v2122_v33 = vld [vmem:[%s2483_s21 + $0x2c] sm:$0x1]  ;;  %p2291_p11 = scmp.ne.s32.totalorder %s3078_s17, %s2290_s25  ;;  %s2296_s28 = scalar_lea.vmem %s2295_s27, 2048 }
  0x24   : > { %v472_v50 = vrot.slane %v438_v41, 1  ;;  %v473_v51 = vrot.slane %v439_v42, 1  ;;  %v584_v52 = vmul.f32 %v2498_v15, %v544_v35  ;;  %v585_v53 = vmul.f32 %v2498_v15, %v545_v36  ;;  %p2297_p0 = scmp.lt.s32.totalorder %s3078_s17, %s2295_s27  ;;  %p2298_p1 = scmp.lt.s32.totalorder %s2296_s28, %s2290_s25 }
  0x25   : > { %v471_v55 = vsel %vm468_vm1, %v469_v46, %v470_v47  ;;  %v614_v56 = vrot.slane %v582_v48, 1  ;;  %v615_v57 = vrot.slane %v583_v49, 1  ;;  %v671_v59 = vunpack.c.l.bf16 %v2133_v45  ;;  %v2124_v48 = vld [vmem:[%s2483_s21 + $0x3c] sm:$0x1]  ;;  %p2292_p12 = pnand %p2291_p11, %p2446_p5 }
  0x26   : > { %v474_v60 = vsel %vm468_vm1, %v472_v50, %v473_v51  ;;  %v501_v61 = vadd.f32 %v471_v55, %v416_v37  ;;  %v617_v62 = vrot.slane %v584_v52, 1  ;;  %v618_v63 = vrot.slane %v585_v53, 1  ;;  %p2299_p2 = por %p2298_p1, %p2297_p0 }
  0x27   : > { %v502_v1 = vadd.f32 %v474_v60, %v417_v38  ;;  %v616_v2 = vsel %vm468_vm1, %v614_v56, %v615_v57  ;;  %v672_v3 = vunpack.c.l.bf16 %v2134_v54  ;;  %v673_v4 = vunpack.c.h.bf16 %v2133_v45  ;;  %p2293_p13 = pneg %p2292_p12 }
  0x28   : > { %v570_v6 = vadd.f32 %v562_v43, %v501_v61  ;;  %v619_v11 = vsel %vm468_vm1, %v617_v62, %v618_v63  ;;  %v674_v12 = vunpack.c.l.bf16 %v2136_v58  ;;  %v687_v13 = vmax.f32 %v671_v59, 0.0 }
  0x29   : > { %v571_v18 = vadd.f32 %v563_v44, %v502_v1  ;;  %v688_v19 = vmax.f32 %v672_v3, 0.0  ;;  %v689_v20 = vmax.f32 %v673_v4, 0.0  ;;  %v384_v22 = vunpack.c.l.bf16 %v368_v0  ;;  %p2300_p3 = pnand %p2299_p2, %p2293_p13 }
  0x2a   : > { %v646_v23 = vadd.f32 %v616_v2, %v570_v6  ;;  %v690_v24 = vmax.f32 %v674_v12, 0.0  ;;  %v707_v25 = vmul.f32 %v2501_v16, %v687_v13  ;;  %v727_v26 = vmul.f32 %v2504_v17, %v687_v13 }
  0x2b   : > { %v647_v28 = vadd.f32 %v619_v11, %v571_v18  ;;  %v708_v29 = vmul.f32 %v2501_v16, %v689_v20  ;;  %v728_v30 = vmul.f32 %v2504_v17, %v688_v19  ;;  %v729_v31 = vmul.f32 %v2504_v17, %v689_v20  ;;  %v2137_v20 = vld [vmem:[%s2483_s21 + $0x30] ss:$16 sps:$4 sm:$0xff]  }
  0x2c   : > { %v715_v34 = vadd.f32 %v707_v25, %v646_v23  ;;  %v730_v35 = vmul.f32 %v2504_v17, %v690_v24  ;;  %v759_v36 = vrot.slane %v727_v26, 1  ;;  %v385_v37 = vunpack.c.l.bf16 %v369_v21  ;;  %v2138_v21 = vld [vmem:[%s2483_s21 + $0x34] sm:$0x1] }
  0x2d   : > { %v716_v38 = vadd.f32 %v708_v29, %v647_v28  ;;  %v760_v39 = vrot.slane %v728_v30, 1  ;;  %v762_v40 = vrot.slane %v729_v31, 1  ;;  %v386_v41 = vunpack.c.h.bf16 %v368_v0  ;;  %v2140_v30 = vld [vmem:[%s2483_s21 + $0x44] sm:$0x1] }
  0x2e   : > { %v763_v42 = vrot.slane %v730_v35, 1  ;;  %v387_v43 = vunpack.c.l.bf16 %v371_v27  ;;  %v400_v44 = vmax.f32 %v384_v22, 0.0  ;;  %v401_v45 = vmax.f32 %v385_v37, 0.0  ;;  %v372_v35 = vld [vmem:[%s2483_s21 + $0x40] ss:$16 sps:$4 sm:$0xff]  }
  0x2f   : > { %v761_v46 = vsel %vm468_vm1, %v759_v36, %v760_v39  ;;  %v402_v47 = vmax.f32 %v386_v41, 0.0  ;;  %v530_v49 = vunpack.c.l.bf16 %v2121_v32  ;;  %v531_v50 = vunpack.c.l.bf16 %v2122_v33 }
  0x30   : > { %v764_v51 = vsel %vm468_vm1, %v762_v40, %v763_v42  ;;  %v791_v52 = vadd.f32 %v761_v46, %v715_v34  ;;  %v403_v53 = vmax.f32 %v387_v43, 0.0  ;;  %v418_v54 = vmul.f32 %v2486_v9, %v400_v44 }
  0x31   : > { %v792_v55 = vadd.f32 %v764_v51, %v716_v38  ;;  %v419_v56 = vmul.f32 %v2486_v9, %v402_v47  ;;  %v440_v57 = vmul.f32 %v2489_v10, %v400_v44  ;;  %v441_v58 = vmul.f32 %v2489_v10, %v401_v45  ;;  %v373_v44 = vld [vmem:[%s2483_s21 + $0x44] sm:$0x1] }
  0x32   : > { %v442_v59 = vmul.f32 %v2489_v10, %v402_v47  ;;  %v443_v60 = vmul.f32 %v2489_v10, %v403_v53  ;;  %v532_v61 = vunpack.c.h.bf16 %v2121_v32  ;;  %v533_v62 = vunpack.c.l.bf16 %v2124_v48  ;;  %v375_v53 = vld [vmem:[%s2483_s21 + $0x54] sm:$0x1] }
  0x33   : > { %v799_v63 = vpack.c.bf16 %v792_v55, %v791_v52  ;;  %v475_v0 = vrot.slane %v440_v57, 1  ;;  %v476_v1 = vrot.slane %v441_v58, 1  ;;  %v546_v2 = vmax.f32 %v530_v49, 0.0 }
  0x34   : > { %v478_v3 = vrot.slane %v442_v59, 1  ;;  %v479_v4 = vrot.slane %v443_v60, 1  ;;  %v547_v6 = vmax.f32 %v531_v50, 0.0  ;;  %v548_v11 = vmax.f32 %v532_v61, 0.0 }
  0x35   : > { %2190 = vmatprep.mubr.msk.bf16.mxu0 %vm804_vm2, %v799_v63  ;;  %v477_v12 = vsel %vm468_vm1, %v475_v0, %v476_v1  ;;  %v549_v13 = vmax.f32 %v533_v62, 0.0  ;;  %v564_v18 = vmul.f32 %v2495_v14, %v546_v2  ;;  %v586_v19 = vmul.f32 %v2498_v15, %v546_v2  ;;  %v2125_v62 = vld [vmem:[%s2483_s21 + $0x48] ss:$16 sps:$4 sm:$0xff]   ;;  %v2126_v63 = vld [vmem:[%s2483_s21 + $0x4c] sm:$0x1] }
  0x36   : > { %v480_v22 = vsel %vm468_vm1, %v478_v3, %v479_v4  ;;  %v503_v23 = vadd.f32 %v477_v12, %v418_v54  ;;  %v565_v24 = vmul.f32 %v2495_v14, %v548_v11  ;;  %v587_v25 = vmul.f32 %v2498_v15, %v547_v6 }
  0x37   : > { %v504_v26 = vadd.f32 %v480_v22, %v419_v56  ;;  %v588_v27 = vmul.f32 %v2498_v15, %v548_v11  ;;  %v589_v28 = vmul.f32 %v2498_v15, %v549_v13  ;;  %v620_v29 = vrot.slane %v586_v19, 1  ;;  %v2128_v19 = vld [vmem:[%s2483_s21 + $0x5c] sm:$0x1] }
  0x38   : > { %v572_v31 = vadd.f32 %v564_v18, %v503_v23  ;;  %v621_v32 = vrot.slane %v587_v25, 1  ;;  %v675_v33 = vunpack.c.l.bf16 %v2137_v20  ;;  %v676_v34 = vunpack.c.l.bf16 %v2138_v21 }
  0x39   : > { %v573_v36 = vadd.f32 %v565_v24, %v504_v26  ;;  %v623_v37 = vrot.slane %v588_v27, 1  ;;  %v624_v38 = vrot.slane %v589_v28, 1  ;;  %v677_v39 = vunpack.c.h.bf16 %v2137_v20 }
  0x3a   : > { %v622_v40 = vsel %vm468_vm1, %v620_v29, %v621_v32  ;;  %v678_v41 = vunpack.c.l.bf16 %v2140_v30  ;;  %v691_v42 = vmax.f32 %v675_v33, 0.0  ;;  %v692_v43 = vmax.f32 %v676_v34, 0.0  ;;  %v2141_v34 = vld [vmem:[%s2483_s21 + $0x50] ss:$16 sps:$4 sm:$0xff]  }
  0x3b   : > { %v625_v45 = vsel %vm468_vm1, %v623_v37, %v624_v38  ;;  %v648_v46 = vadd.f32 %v622_v40, %v572_v31  ;;  %v693_v47 = vmax.f32 %v677_v39, 0.0  ;;  %v388_v48 = vunpack.c.l.bf16 %v372_v35 }
  0x3c   : > { %v649_v49 = vadd.f32 %v625_v45, %v573_v36  ;;  %v694_v50 = vmax.f32 %v678_v41, 0.0  ;;  %v709_v51 = vmul.f32 %v2501_v16, %v691_v42  ;;  %v731_v52 = vmul.f32 %v2504_v17, %v691_v42 }
  0x3d   : > { %v710_v54 = vmul.f32 %v2501_v16, %v693_v47  ;;  %v732_v55 = vmul.f32 %v2504_v17, %v692_v43  ;;  %v733_v56 = vmul.f32 %v2504_v17, %v693_v47  ;;  %v389_v57 = vunpack.c.l.bf16 %v373_v44 }
  0x3e   : > { %v717_v58 = vadd.f32 %v709_v51, %v648_v46  ;;  %v734_v59 = vmul.f32 %v2504_v17, %v694_v50  ;;  %v765_v60 = vrot.slane %v731_v52, 1  ;;  %v390_v61 = vunpack.c.h.bf16 %v372_v35  ;;  %v2142_v46 = vld [vmem:[%s2483_s21 + $0x54] sm:$0x1]  ;;  %v2144_v52 = vld [vmem:[%s2483_s21 + $0x64] sm:$0x1] }
  0x3f   : > { %v718_v0 = vadd.f32 %v710_v54, %v649_v49  ;;  %v766_v1 = vrot.slane %v732_v55, 1  ;;  %v768_v2 = vrot.slane %v733_v56, 1  ;;  %v391_v3 = vunpack.c.l.bf16 %v375_v53 }
  0x40   : > { %v769_v4 = vrot.slane %v734_v59, 1  ;;  %v404_v6 = vmax.f32 %v388_v48, 0.0  ;;  %v405_v11 = vmax.f32 %v389_v57, 0.0  ;;  %v406_v12 = vmax.f32 %v390_v61, 0.0  ;;  %v376_v61 = vld [vmem:[%s2483_s21 + $0x60] ss:$16 sps:$4 sm:$0xff]  }
  0x41   : > { %v767_v13 = vsel %vm468_vm1, %v765_v60, %v766_v1  ;;  %v407_v18 = vmax.f32 %v391_v3, 0.0  ;;  %v534_v20 = vunpack.c.l.bf16 %v2125_v62  ;;  %v535_v21 = vunpack.c.l.bf16 %v2126_v63 }
  0x42   : > { %v770_v22 = vsel %vm468_vm1, %v768_v2, %v769_v4  ;;  %v793_v23 = vadd.f32 %v767_v13, %v717_v58  ;;  %v420_v24 = vmul.f32 %v2486_v9, %v404_v6  ;;  %v421_v25 = vmul.f32 %v2486_v9, %v406_v12 }
  0x43   : > { %v794_v26 = vadd.f32 %v770_v22, %v718_v0  ;;  %v444_v27 = vmul.f32 %v2489_v10, %v404_v6  ;;  %v445_v28 = vmul.f32 %v2489_v10, %v405_v11  ;;  %v446_v29 = vmul.f32 %v2489_v10, %v406_v12  ;;  %v377_v11 = vld [vmem:[%s2483_s21 + $0x64] sm:$0x1] }
  0x44   : > { %v447_v30 = vmul.f32 %v2489_v10, %v407_v18  ;;  %v536_v31 = vunpack.c.h.bf16 %v2125_v62  ;;  %v537_v32 = vunpack.c.l.bf16 %v2128_v19  ;;  %v550_v33 = vmax.f32 %v534_v20, 0.0 }
  0x45   : > { %v800_v35 = vpack.c.bf16 %v794_v26, %v793_v23  ;;  %v481_v36 = vrot.slane %v444_v27, 1  ;;  %v482_v37 = vrot.slane %v445_v28, 1  ;;  %v484_v38 = vrot.slane %v446_v29, 1  ;;  %v2129_v29 = vld [vmem:[%s2483_s21 + $0x68] ss:$16 sps:$4 sm:$0xff]  }
  0x46   : > { %v485_v39 = vrot.slane %v447_v30, 1  ;;  %v551_v40 = vmax.f32 %v535_v21, 0.0  ;;  %v552_v41 = vmax.f32 %v536_v31, 0.0  ;;  %v553_v42 = vmax.f32 %v537_v32, 0.0 }
  0x47   : > { %2191 = vmatmul.mubr.msk.bf16.vlgmr.msra.gmra.mrb[0].mxu0 %vm804_vm2, %v800_v35  ;;  %v483_v43 = vsel %vm468_vm1, %v481_v36, %v482_v37  ;;  %v566_v44 = vmul.f32 %v2495_v14, %v550_v33  ;;  %v590_v45 = vmul.f32 %v2498_v15, %v550_v33  ;;  %v679_v47 = vunpack.c.l.bf16 %v2141_v34 }
  0x48   : > { %v486_v48 = vsel %vm468_vm1, %v484_v38, %v485_v39  ;;  %v505_v49 = vadd.f32 %v483_v43, %v420_v24  ;;  %v567_v50 = vmul.f32 %v2495_v14, %v552_v41  ;;  %v591_v51 = vmul.f32 %v2498_v15, %v551_v40  ;;  %v379_v24 = vld [vmem:[%s2483_s21 + $0x74] sm:$0x1] }
  0x49   : > { %v506_v53 = vadd.f32 %v486_v48, %v421_v25  ;;  %v592_v54 = vmul.f32 %v2498_v15, %v552_v41  ;;  %v593_v55 = vmul.f32 %v2498_v15, %v553_v42  ;;  %v626_v56 = vrot.slane %v590_v45, 1 }
  0x4a   : > { %v574_v57 = vadd.f32 %v566_v44, %v505_v49  ;;  %v627_v58 = vrot.slane %v591_v51, 1  ;;  %v680_v59 = vunpack.c.l.bf16 %v2142_v46  ;;  %v681_v60 = vunpack.c.h.bf16 %v2141_v34  ;;  %v2130_v34 = vld [vmem:[%s2483_s21 + $0x6c] sm:$0x1]  ;;  %v2132_v46 = vld [vmem:[%s2483_s21 + $0x7c] sm:$0x1] }
  0x4b   : > { %v575_v62 = vadd.f32 %v567_v50, %v506_v53  ;;  %v629_v63 = vrot.slane %v592_v54, 1  ;;  %v630_v0 = vrot.slane %v593_v55, 1  ;;  %v682_v1 = vunpack.c.l.bf16 %v2144_v52 }
  0x4c   : > { %v628_v2 = vsel %vm468_vm1, %v626_v56, %v627_v58  ;;  %v695_v3 = vmax.f32 %v679_v47, 0.0  ;;  %v696_v4 = vmax.f32 %v680_v59, 0.0  ;;  %v697_v6 = vmax.f32 %v681_v60, 0.0  ;;  %v2145_v60 = vld [vmem:[%s2483_s21 + $0x70] ss:$16 sps:$4 sm:$0xff]  }
  0x4d   : > { %v631_v12 = vsel %vm468_vm1, %v629_v63, %v630_v0  ;;  %v650_v13 = vadd.f32 %v628_v2, %v574_v57  ;;  %v698_v18 = vmax.f32 %v682_v1, 0.0  ;;  %v392_v19 = vunpack.c.l.bf16 %v376_v61 }
  0x4e   : > { %v651_v20 = vadd.f32 %v631_v12, %v575_v62  ;;  %v711_v21 = vmul.f32 %v2501_v16, %v695_v3  ;;  %v712_v22 = vmul.f32 %v2501_v16, %v697_v6  ;;  %v735_v23 = vmul.f32 %v2504_v17, %v695_v3 }
  0x4f   : > { %v736_v25 = vmul.f32 %v2504_v17, %v696_v4  ;;  %v737_v26 = vmul.f32 %v2504_v17, %v697_v6  ;;  %v738_v27 = vmul.f32 %v2504_v17, %v698_v18  ;;  %v393_v28 = vunpack.c.l.bf16 %v377_v11  ;;  %v2146_v4 = vld [vmem:[%s2483_s21 + $0x74] sm:$0x1] }
  0x50   : > { %v719_v30 = vadd.f32 %v711_v21, %v650_v13  ;;  %v720_v31 = vadd.f32 %v712_v22, %v651_v20  ;;  %v771_v32 = vrot.slane %v735_v23, 1  ;;  %v394_v33 = vunpack.c.h.bf16 %v376_v61  ;;  %v2148_v21 = vld [vmem:[%s2483_s21 + $0x84] sm:$0x1] }
  0x51   : > { %v772_v35 = vrot.slane %v736_v25, 1  ;;  %v774_v36 = vrot.slane %v737_v26, 1  ;;  %v775_v37 = vrot.slane %v738_v27, 1  ;;  %v395_v38 = vunpack.c.l.bf16 %v379_v24 }
  0x52   : > { %v408_v39 = vmax.f32 %v392_v19, 0.0  ;;  %v409_v40 = vmax.f32 %v393_v28, 0.0  ;;  %v410_v41 = vmax.f32 %v394_v33, 0.0  ;;  %v538_v42 = vunpack.c.l.bf16 %v2129_v29 }
  0x53   : > { %v773_v43 = vsel %vm468_vm1, %v771_v32, %v772_v35  ;;  %v776_v44 = vsel %vm468_vm1, %v774_v36, %v775_v37  ;;  %v411_v45 = vmax.f32 %v395_v38, 0.0  ;;  %v539_v47 = vunpack.c.l.bf16 %v2130_v34 }
  0x54   : > { %v795_v48 = vadd.f32 %v773_v43, %v719_v30  ;;  %v796_v49 = vadd.f32 %v776_v44, %v720_v31  ;;  %v422_v50 = vmul.f32 %v2486_v9, %v408_v39  ;;  %v423_v51 = vmul.f32 %v2486_v9, %v410_v41 }
  0x55   : > { %v448_v52 = vmul.f32 %v2489_v10, %v408_v39  ;;  %v449_v53 = vmul.f32 %v2489_v10, %v409_v40  ;;  %v450_v54 = vmul.f32 %v2489_v10, %v410_v41  ;;  %v451_v55 = vmul.f32 %v2489_v10, %v411_v45 }
  0x56   : > { %v801_v56 = vpack.c.bf16 %v796_v49, %v795_v48  ;;  %v540_v57 = vunpack.c.h.bf16 %v2129_v29  ;;  %v541_v58 = vunpack.c.l.bf16 %v2132_v46  ;;  %v554_v59 = vmax.f32 %v538_v42, 0.0 }
  0x57   : > { %v487_v61 = vrot.slane %v448_v52, 1  ;;  %v488_v62 = vrot.slane %v449_v53, 1  ;;  %v490_v63 = vrot.slane %v450_v54, 1  ;;  %v491_v0 = vrot.slane %v451_v55, 1 }
  0x58   : > { %2194 = vmatprep.mubr.msk.bf16.mxu0 %vm804_vm2, %v801_v56  ;;  %v555_v9 = vmax.f32 %v539_v47, 0.0  ;;  %v556_v1 = vmax.f32 %v540_v57, 0.0  ;;  %v557_v2 = vmax.f32 %v541_v58, 0.0  ;;  %v568_v3 = vmul.f32 %v2495_v14, %v554_v59  ;;  %v2283_v56 = vld [vmem:[%s3129_s6 + $0x8] sm:$0xff]   ;;  %v2284_v57 = vld [vmem:[%s3129_s6 + $0x10] sm:$0xff]   ;;  %v2285_v58 = vld [vmem:[%s3129_s6 + $0x18] sm:$0xff]  }
  0x59   : > { %v489_v10 = vsel %vm468_vm1, %v487_v61, %v488_v62  ;;  %v492_v6 = vsel %vm468_vm1, %v490_v63, %v491_v0  ;;  %v594_v11 = vmul.f32 %v2498_v15, %v554_v59  ;;  %v683_v12 = vunpack.c.l.bf16 %v2145_v60  ;;  %v2286_v59 = vld [vmem:[%s3129_s6 + $0x20] sm:$0xff]   ;;  %v2288_v61 = vld [vmem:[%s3129_s6 + $0x30] sm:$0xff]   ;;  %v2289_v62 = vld [vmem:[%s3129_s6 + $0x38] sm:$0xff]  }
  0x5a   : > { %v507_v13 = vadd.f32 %v489_v10, %v422_v50  ;;  %v508_v18 = vadd.f32 %v492_v6, %v423_v51  ;;  %v569_v19 = vmul.f32 %v2495_v14, %v556_v1  ;;  %v595_v20 = vmul.f32 %v2498_v15, %v555_v9  ;;  %v335_v9 = vld [vmem:[%s3128_s5] sm:$0x7] }
  0x5b   : > { %v596_v22 = vmul.f32 %v2498_v15, %v556_v1  ;;  %v597_v23 = vmul.f32 %v2498_v15, %v557_v2  ;;  %v632_v24 = vrot.slane %v594_v11, 1  ;;  %v684_v25 = vunpack.c.l.bf16 %v2146_v4 }
  0x5c   : > { %v576_v26 = vadd.f32 %v568_v3, %v507_v13  ;;  %v577_v27 = vadd.f32 %v569_v19, %v508_v18  ;;  %v633_v28 = vrot.slane %v595_v20, 1  ;;  %v685_v29 = vunpack.c.h.bf16 %v2145_v60  ;;  %v2287_v60 = vld [vmem:[%s3129_s6 + $0x28] sm:$0xff]  }
  0x5d   : > { %v635_v30 = vrot.slane %v596_v22, 1  ;;  %v636_v31 = vrot.slane %v597_v23, 1  ;;  %v686_v32 = vunpack.c.l.bf16 %v2148_v21  ;;  %v699_v33 = vmax.f32 %v683_v12, 0.0  ;;  %v2685_v22 = vld [vmem:[%s3126_s3] ss:$0 sm:$0xff] }
  0x5e   : > { %v634_v34 = vsel %vm468_vm1, %v632_v24, %v633_v28  ;;  %v700_v14 = vmax.f32 %v684_v25, 0.0  ;;  %v701_v35 = vmax.f32 %v685_v29, 0.0  ;;  %v2354_v55 = vmov 0  }
  0x5f   : > { %v637_v36 = vsel %vm468_vm1, %v635_v30, %v636_v31  ;;  %v652_v37 = vadd.f32 %v634_v34, %v576_v26  ;;  %v702_v38 = vmax.f32 %v686_v32, 0.0  ;;  %v713_v15 = vmul.f32 %v2501_v16, %v699_v33  ;;  %342 = vst [vmem:[#allocation2] sm:$0xff] %v2354_v55  ;;  %343 = vst [vmem:[#allocation2 + $0x8] sm:$0xff] %v2354_v55  ;;  %v2695_v26 = vld [vmem:[%s3127_s4] ss:$0 sm:$0xff] }
  0x60   : > { %v653_v39 = vadd.f32 %v637_v36, %v577_v27  ;;  %v714_v40 = vmul.f32 %v2501_v16, %v701_v35  ;;  %v739_v41 = vmul.f32 %v2504_v17, %v699_v33  ;;  %v740_v42 = vmul.f32 %v2504_v17, %v700_v14  ;;  %348 = vst [vmem:[#allocation2 + $0x10] sm:$0xff] %v2354_v55 }
  0x61   : > { %v721_v43 = vadd.f32 %v713_v15, %v652_v37  ;;  %v741_v44 = vmul.f32 %v2504_v17, %v701_v35  ;;  %v742_v45 = vmul.f32 %v2504_v17, %v702_v38  ;;  %349 = vst [vmem:[#allocation2 + $0x20] sm:$0xff] %v2354_v55  ;;  %350 = vst [vmem:[#allocation2 + $0x30] sm:$0xff] %v2354_v55  ;;  %v2282_v17 = vld [vmem:[%s3129_s6] sm:$0xff]   ;;  %v2667_v3 = vsub.s32 2, %v2469_v5 }
  0x62   : > { %v722_v46 = vadd.f32 %v714_v40, %v653_v39  ;;  %v777_v47 = vrot.slane %v739_v41, 1  ;;  %v778_v48 = vrot.slane %v740_v42, 1  ;;  %356 = vst [vmem:[#allocation2 + $0x18] sm:$0xf0] %v2354_v55  ;;  %357 = vst [vmem:[#allocation2 + $0x28] sm:$0xf0] %v2354_v55  ;;  %2198 = vmatprep.subr.bf16.mxu0 %v2282_v17  ;;  %2222 = vmatprep.subr.bf16.mxu1 %v2282_v17 }
  0x63   : > { %v780_v49 = vrot.slane %v741_v44, 1  ;;  %v781_v50 = vrot.slane %v742_v45, 1  ;;  %358 = vst [vmem:[#allocation2 + $0x38] sm:$0xf0] %v2354_v55  ;;  %345 = vst [vmem:[#allocation2 + $0x90] sm:$0xff] %v2354_v55  ;;  %2199 = vmatpush3.bf16.msra.mxu0 %v2282_v17  ;;  %2230 = vmatpush3.bf16.msra.mxu1 %v2282_v17  ;;  %v2670_v6 = vrot.slane %v335_v9, %v2478_v8 }
  0x64   : > { %v779_v51 = vsel %vm468_vm1, %v777_v47, %v778_v48  ;;  %346 = vst [vmem:[#allocation2 + $0x98] sm:$0xff] %v2354_v55  ;;  %351 = vst [vmem:[#allocation2 + $0x40] sm:$0xff] %v2354_v55  ;;  %2200 = vmatprep.subr.bf16.mxu0 %v2283_v56  ;;  %2223 = vmatprep.subr.bf16.mxu1 %v2283_v56  ;;  %v2674_v13 = vrot.slane %v335_v9, %v2667_v3 }
  0x65   : > { %v782_v52 = vsel %vm468_vm1, %v780_v49, %v781_v50  ;;  %v797_v53 = vadd.f32 %v779_v51, %v721_v43  ;;  %352 = vst [vmem:[#allocation2 + $0x50] sm:$0xff] %v2354_v55  ;;  %353 = vst [vmem:[#allocation2 + $0x60] sm:$0xff] %v2354_v55  ;;  %v2679_v21 = vrot.slane %v335_v9, %v2475_v7  ;;  %v336_v9 = vld [vmem:[%s3128_s5 + $0x4] sm:$0x7] }
  0x66   : > { %v798_v16 = vadd.f32 %v782_v52, %v722_v46  ;;  %354 = vst [vmem:[#allocation2 + $0x70] sm:$0xff] %v2354_v55  ;;  %355 = vst [vmem:[#allocation2 + $0x80] sm:$0xff] %v2354_v55  ;;  %v938_v63 = vld [vmem:[#allocation2] sm:$0x80]  ;;  %v939_v0 = vld [vmem:[#allocation2 + $0x8] sm:$0xf] }
  0x67   : > { %359 = vst [vmem:[#allocation2 + $0x48] sm:$0xf0] %v2354_v55  ;;  %360 = vst [vmem:[#allocation2 + $0x58] sm:$0xf0] %v2354_v55  ;;  %2201 = vmatpush3.bf16.msra.mxu0 %v2283_v56  ;;  %2231 = vmatpush3.bf16.msra.mxu1 %v2283_v56  ;;  %v971_v1 = vrot.slane %v938_v63, 4  ;;  %v972_v2 = vrot.slane %v939_v0, 4  ;;  %v1055_v10 = vunpack.c.l.bf16 %v939_v0 }
  0x68   : > { %v802_v54 = vpack.c.bf16 %v798_v16, %v797_v53  ;;  %361 = vst [vmem:[#allocation2 + $0x68] sm:$0xf0] %v2354_v55  ;;  %362 = vst [vmem:[#allocation2 + $0x78] sm:$0xf0] %v2354_v55  ;;  %2202 = vmatprep.subr.bf16.mxu0 %v2284_v57  ;;  %2224 = vmatprep.subr.bf16.mxu1 %v2284_v57  ;;  %v1115_v4 = vld [vmem:[#allocation2 + $0x8] sm:$0x1f] }
  0x69   : > { %363 = vst [vmem:[#allocation2 + $0x88] sm:$0xf0] %v2354_v55  ;;  %v973_v11 = vsel %vm817_vm0, %v971_v1, %v972_v2  ;;  %v1123_v12 = vunpack.c.l.bf16 %v1115_v4  ;;  %v1124_v18 = vunpack.c.h.bf16 %v1115_v4  ;;  %v2676_v19 = vld [vmem:[#allocation2 + $0x10] sm:$0x80]  ;;  %v1067_v5 = vmul.f32 %v2670_v6, %v1055_v10  ;;  %v2699_v30 = vld [vmem:[#allocation2 + $0x20] sm:$0x80] }
  0x6a   : > { %2195 = vmatmul.mubr.msk.bf16.gmra.mrb[4].mxu0 %vm804_vm2, %v802_v54  ;;  %v1003_v20 = vunpack.c.l.bf16 %v973_v11  ;;  %v1004_v23 = vunpack.c.h.bf16 %v973_v11  ;;  %v2690_v25 = vld [vmem:[#allocation2 + $0x10] sm:$0x80]  ;;  %v974_v29 = vrot.slane %v2676_v19, 4  ;;  %v2706_v36 = vld [vmem:[#allocation2 + $0x20] sm:$0x80]  ;;  %v1267_v45 = vrot.slane %v2699_v30, 4 }
  0x6b   : > { %2203 = vmatpush3.bf16.msra.mxu0 %v2284_v57  ;;  %2232 = vmatpush3.bf16.msra.mxu1 %v2284_v57  ;;  %v2688_v24 = vmul.f32 %v2674_v13, %v1123_v12  ;;  %v1144_v27 = vmul.f32 %v2674_v13, %v1124_v18  ;;  %v2701_v31 = vld [vmem:[#allocation2 + $0x30] sm:$0x80]  ;;  %v1083_v14 = vrot.slane %v1067_v5, 1  ;;  %v1264_v35 = vrot.slane %v2690_v25, 4  ;;  %v2711_v40 = vld [vmem:[#allocation2 + $0x20] sm:$0x80] }
  0x6c   : > { %2204 = vmatprep.subr.bf16.mxu0 %v2285_v58  ;;  %2225 = vmatprep.subr.bf16.mxu1 %v2285_v58  ;;  %v1023_v34 = vmul.f32 %v2679_v21, %v1003_v20  ;;  %v1024_v15 = vmul.f32 %v2679_v21, %v1004_v23  ;;  %v2716_v46 = vld [vmem:[#allocation2 + $0x30] sm:$0x80]  ;;  %v2724_v52 = vld [vmem:[#allocation2 + $0x40] sm:$0x80]  ;;  %v337_v11 = vld [vmem:[%s3128_s5 + $0x8] sm:$0x7] }
  0x6d   : > { %v1176_v39 = vrot.slane %v2688_v24, 2  ;;  %v1177_v44 = vrot.slane %v1144_v27, 2  ;;  %v2722_v51 = vld [vmem:[#allocation2 + $0x30] sm:$0x80]  ;;  %v2728_v17 = vld [vmem:[#allocation2 + $0x40] sm:$0x80] }
  0x6e   : > { %v1099_v54 = vadd.f32 %v1083_v14, %v1023_v34  ;;  %v2730_v56 = vld [vmem:[#allocation2 + $0x50] sm:$0x80] }
  0x6f   : > { %2205 = vmatpush3.bf16.msra.mxu0 %v2285_v58  ;;  %2233 = vmatpush3.bf16.msra.mxu1 %v2285_v58  ;;  %v1178_v5 = vsel %vm1175_vm3, %v1176_v39, %v1177_v44  ;;  %v2751_v27 = vld [vmem:[#allocation2 + $0x50] sm:$0x80] }
  0x70   : > { %2206 = vmatprep.subr.bf16.mxu0 %v2286_v59  ;;  %2226 = vmatprep.subr.bf16.mxu1 %v2286_v59  ;;  %v2757_v34 = vld [vmem:[#allocation2 + $0x70] sm:$0x80]  ;;  %v2776_v44 = vadd.f32 %v1176_v39, %v1099_v54 }
  0x73   : > { %2207 = vmatpush3.bf16.msra.mxu0 %v2286_v59  ;;  %2234 = vmatpush3.bf16.msra.mxu1 %v2286_v59  ;;  %v1100_v59 = vadd.f32 %v1083_v14, %v1024_v15  ;;  %v2759_v14 = vld [vmem:[#allocation2 + $0x70] sm:$0x80]  ;;  %v2768_v15 = vrot.slane %v336_v9, %v2667_v3 }
  0x74   : > { %2208 = vmatprep.subr.bf16.mxu0 %v2287_v60  ;;  %2227 = vmatprep.subr.bf16.mxu1 %v2287_v60 }
  0x77   : > { %2209 = vmatpush3.bf16.msra.mxu0 %v2287_v60  ;;  %2235 = vmatpush3.bf16.msra.mxu1 %v2287_v60 }
  0x78   : > { %2210 = vmatprep.subr.bf16.mxu0 %v2288_v61  ;;  %2228 = vmatprep.subr.bf16.mxu1 %v2288_v61 }
  0x7b   : > { %2211 = vmatpush3.bf16.msra.mxu0 %v2288_v61  ;;  %2236 = vmatpush3.bf16.msra.mxu1 %v2288_v61  ;;  %v2734_v61 = vld [vmem:[#allocation2 + $0x40] sm:$0x80] }
  0x7c   : > { %2212 = vmatprep.subr.bf16.mxu0 %v2289_v62  ;;  %2229 = vmatprep.subr.bf16.mxu1 %v2289_v62 }
  0x7f   : > { %2213 = vmatpush3.bf16.msra.mxu0 %v2289_v62  ;;  %2237 = vmatpush3.bf16.msra.mxu1 %v2289_v62  ;;  %v2736_v62 = vld [vmem:[#allocation2 + $0x50] sm:$0x80] }
 0x11a   : > { %v2192_v28 = vpop.f32.mrb[0].mxu0 }
 0x11b   : > { %v894_v32 = vmul.f32 %v2192_v28, %v2685_v22  ;;  %v855_v33 = vpop.f32.mrb[1].mxu0  ;;  %v2753_v28 = vld [vmem:[#allocation2 + $0x60] sm:$0x80] }
 0x11c   : > { %v892_v37 = vmul.f32 %v2685_v22, %v855_v33  ;;  %v2193_v38 = vpop.f32.mrb[2].mxu0  ;;  %v2755_v33 = vld [vmem:[#allocation2 + $0x60] sm:$0x80] }
 0x11d   : > { %v908_v41 = vadd.f32 %v2695_v26, %v894_v32  ;;  %v895_v42 = vmul.f32 %v2193_v38, %v2685_v22  ;;  %v858_v43 = vpop.f32.mrb[3].mxu0  ;;  %v2765_v38 = vrot.slane %v336_v9, %v2478_v8 }
 0x11e   : > { %v906_v47 = vadd.f32 %v2695_v26, %v892_v37  ;;  %v893_v48 = vmul.f32 %v2685_v22, %v858_v43  ;;  %v2762_v37 = vrot.slane %v336_v9, %v2475_v7  ;;  %v2774_v43 = vld [vmem:[#allocation2 + $0x80] sm:$0x80] }
 0x11f   : > { %v916_v53 = vmax.f32 %v908_v41, 0.0  ;;  %v909_v16 = vadd.f32 %v2695_v26, %v895_v42  ;;  %v2770_v41 = vld [vmem:[#allocation2 + $0x60] sm:$0x80]  ;;  %v2772_v42 = vld [vmem:[#allocation2 + $0x70] sm:$0x80] }
 0x120   : > { %v914_v57 = vmax.f32 %v906_v47, 0.0  ;;  %v907_v58 = vadd.f32 %v2695_v26, %v893_v48  ;;  %v2778_v47 = vadd.f32 %v1178_v5, %v1100_v59  ;;  %v2781_v48 = vrot.slane %v337_v11, %v2475_v7 }
 0x121   : > { %v924_v63 = vpack.c.bf16 %v916_v53, %v916_v53  ;;  %v917_v0 = vmax.f32 %v909_v16, 0.0  ;;  %v2784_v53 = vrot.slane %v337_v11, %v2478_v8  ;;  %v2786_v16 = vld [vmem:[#allocation2 + $0x80] sm:$0x80]  ;;  %v2810_v7 = vrot.slane %v337_v11, %v2667_v3 }
 0x122   : > { %v922_v4 = vpack.c.bf16 %v914_v57, %v914_v57  ;;  %v915_v10 = vmax.f32 %v907_v58, 0.0  ;;  %3137 = vst [vmem:[#allocation6_spill] sm:$0xff] %v2786_v16  ;;  %v1539_v57 = vld [vmem:[#allocation2 + $0x90] sm:$0x80]  ;;  %v2788_v58 = vld [vmem:[#allocation2 + $0x98] sm:$0xf] }
 0x123   : > { %932 = vst [vmem:[#allocation2 + $0x38] sm:$0xf] %v924_v63  ;;  %v925_v20 = vpack.c.bf16 %v917_v0, %v917_v0  ;;  %3138 = vst [vmem:[#allocation7_spill] sm:$0xff] %v2788_v58  ;;  %v1578_v9 = vrot.slane %v1539_v57, 4  ;;  %v1579_v39 = vrot.slane %v2788_v58, 4 }
 0x124   : > { %930 = vst [vmem:[#allocation2 + $0x18] sm:$0xf] %v922_v4  ;;  %v923_v32 = vpack.c.bf16 %v915_v10, %v915_v10 }
 0x125   : > { %933 = vst [vmem:[#allocation2 + $0x48] sm:$0xf] %v925_v20  ;;  %v2801_v5 = vsel %vm817_vm0, %v1578_v9, %v1579_v39 }
 0x126   : > { %931 = vst [vmem:[#allocation2 + $0x28] sm:$0xf] %v923_v32 }
 0x12a   : > { %v2803_v32 = vld [vmem:[#allocation2 + $0x38] sm:$0xf] }
 0x12b   : > { %v2805_v57 = vld [vmem:[#allocation2 + $0x38] sm:$0xf] }
 0x12c   : > { %v2807_v54 = vld [vmem:[#allocation2 + $0x38] sm:$0x1f] }
 0x12d   : > { %v941_v59 = vld [vmem:[#allocation2 + $0x18] sm:$0xf]  ;;  %v2819_v12 = vld [vmem:[#allocation2 + $0x28] sm:$0xf] }
 0x12e   : > { %v1116_v9 = vld [vmem:[#allocation2 + $0x18] sm:$0x1f]  ;;  %v975_v24 = vrot.slane %v941_v59, 4  ;;  %v1056_v23 = vunpack.c.l.bf16 %v941_v59  ;;  %v1235_v4 = vld [vmem:[#allocation2 + $0x28] sm:$0xf] }
 0x12f   : > { %v1125_v3 = vunpack.c.l.bf16 %v1116_v9  ;;  %v1126_v11 = vunpack.c.h.bf16 %v1116_v9  ;;  %v1233_v18 = vld [vmem:[#allocation2 + $0x18] sm:$0xf]  ;;  %v1268_v39 = vrot.slane %v1235_v4, 4  ;;  %v1409_v58 = vld [vmem:[#allocation2 + $0x28] sm:$0x1f] }
 0x130   : > { %v1408_v8 = vld [vmem:[#allocation2 + $0x18] sm:$0x1f]  ;;  %v1265_v10 = vrot.slane %v1233_v18, 4  ;;  %v1348_v2 = vunpack.c.l.bf16 %v1233_v18  ;;  %v976_v55 = vsel %vm817_vm0, %v974_v29, %v975_v24  ;;  %v1068_v63 = vmul.f32 %v2670_v6, %v1056_v23 }
 0x131   : > { %v1416_v1 = vunpack.c.l.bf16 %v1408_v8  ;;  %v1417_v60 = vunpack.c.h.bf16 %v1408_v8  ;;  %v1145_v59 = vmul.f32 %v2674_v13, %v1125_v3  ;;  %v1005_v9 = vunpack.c.l.bf16 %v976_v55 }
 0x132   : > { %v1006_v0 = vunpack.c.h.bf16 %v976_v55  ;;  %v1146_v49 = vmul.f32 %v2674_v13, %v1126_v11  ;;  %v1266_v18 = vsel %vm817_vm0, %v1264_v35, %v1265_v10  ;;  %v1084_v50 = vrot.slane %v1068_v63, 1 }
 0x133   : > { %v1179_v8 = vrot.slane %v1145_v59, 2  ;;  %v1296_v20 = vunpack.c.l.bf16 %v1266_v18  ;;  %v1025_v19 = vmul.f32 %v2679_v21, %v1005_v9  ;;  %v1297_v23 = vunpack.c.h.bf16 %v1266_v18 }
 0x134   : > { %v1026_v29 = vmul.f32 %v2679_v21, %v1006_v0  ;;  %v1180_v24 = vrot.slane %v1146_v49, 2  ;;  %v1269_v55 = vsel %vm817_vm0, %v1267_v45, %v1268_v39  ;;  %v1349_v11 = vunpack.c.l.bf16 %v1235_v4 }
 0x135   : > { %v1316_v3 = vmul.f32 %v2762_v37, %v1296_v20  ;;  %v1360_v25 = vmul.f32 %v2765_v38, %v1348_v2  ;;  %v1101_v35 = vadd.f32 %v1084_v50, %v1025_v19  ;;  %v1298_v59 = vunpack.c.l.bf16 %v1269_v55 }
 0x136   : > { %v1102_v63 = vadd.f32 %v1084_v50, %v1026_v29  ;;  %v1181_v10 = vsel %vm1175_vm3, %v1179_v8, %v1180_v24  ;;  %v1299_v9 = vunpack.c.h.bf16 %v1269_v55  ;;  %v1317_v0 = vmul.f32 %v2762_v37, %v1297_v23  ;;  %v1526_v29 = vld [vmem:[#allocation2 + $0x28] sm:$0xf] }
 0x137   : > { %v1332_v49 = vadd.f32 %v1316_v3, %v2776_v44  ;;  %v1361_v30 = vmul.f32 %v2765_v38, %v1349_v11  ;;  %v1218_v18 = vadd.f32 %v1179_v8, %v1101_v35  ;;  %v1318_v20 = vmul.f32 %v2762_v37, %v1298_v59 }
 0x138   : > { %v1219_v45 = vadd.f32 %v1181_v10, %v1102_v63  ;;  %v1376_v4 = vrot.slane %v1360_v25, 1  ;;  %v1319_v2 = vmul.f32 %v2762_v37, %v1299_v9  ;;  %v1333_v50 = vadd.f32 %v1317_v0, %v2778_v47 }
 0x139   : > { %v1377_v39 = vrot.slane %v1361_v30, 1  ;;  %v1418_v19 = vunpack.c.l.bf16 %v1409_v58  ;;  %v1334_v24 = vadd.f32 %v1318_v20, %v1218_v18  ;;  %v1419_v16 = vunpack.c.h.bf16 %v1409_v58 }
 0x13a   : > { %v1392_v55 = vadd.f32 %v1376_v4, %v1332_v49  ;;  %v1436_v23 = vmul.f32 %v2768_v15, %v1416_v1  ;;  %v1335_v44 = vadd.f32 %v1319_v2, %v1219_v45  ;;  %v1393_v3 = vadd.f32 %v1376_v4, %v1333_v50 }
 0x13b   : > { %v1437_v8 = vmul.f32 %v2768_v15, %v1417_v60  ;;  %v1438_v11 = vmul.f32 %v2768_v15, %v1418_v19  ;;  %v1394_v35 = vadd.f32 %v1377_v39, %v1334_v24  ;;  %v1439_v25 = vmul.f32 %v2768_v15, %v1419_v16 }
 0x13c   : > { %v1468_v63 = vrot.slane %v1436_v23, 2  ;;  %v1558_v10 = vrot.slane %v1526_v29, 4  ;;  %v1395_v47 = vadd.f32 %v1377_v39, %v1335_v44  ;;  %v3139_v0 = vrot.slane %v2805_v57, 4 }
 0x13d   : > { %v1469_v59 = vrot.slane %v1437_v8, 2  ;;  %v1471_v9 = vrot.slane %v1438_v11, 2  ;;  %v3140_v58 = vrot.slane %v2701_v31, 4  ;;  %v1472_v49 = vrot.slane %v1439_v25, 2  ;;  %v2196_v50 = vpop.f32.mrb[4].mxu0 }
 0x13e   : > { %v1508_v30 = vadd.f32 %v1468_v63, %v1392_v55  ;;  %v3141_v60 = vrot.slane %v2706_v36, 4  ;;  %v898_v23 = vmul.f32 %v2196_v50, %v2685_v22  ;;  %v871_v55 = vpop.f32.mrb[5].mxu0 }
 0x13f   : > { %v1562_v1 = vsel %vm817_vm0, %v3140_v58, %v3139_v0  ;;  %v1470_v16 = vsel %vm1175_vm3, %v1468_v63, %v1469_v59  ;;  %v1510_v20 = vadd.f32 %v1471_v9, %v1394_v35  ;;  %v1473_v39 = vsel %vm1175_vm3, %v1471_v9, %v1472_v49  ;;  %v2197_v35 = vpop.f32.mrb[6].mxu0  ;;  %v1701_v59 = vld [vmem:[#allocation2 + $0x28] sm:$0x1f] }
 0x140   : > { %v1559_v18 = vsel %vm817_vm0, %v3141_v60, %v1558_v10  ;;  %v1591_v45 = vunpack.c.l.bf16 %v1562_v1  ;;  %v1509_v19 = vadd.f32 %v1470_v16, %v1393_v3  ;;  %v1592_v24 = vunpack.c.h.bf16 %v1562_v1  ;;  %v874_v0 = vpop.f32.mrb[7].mxu0 }
 0x141   : > { %v1589_v4 = vunpack.c.l.bf16 %v1559_v18  ;;  %v1590_v2 = vunpack.c.h.bf16 %v1559_v18  ;;  %v1511_v44 = vadd.f32 %v1473_v39, %v1395_v47  ;;  %v896_v11 = vmul.f32 %v2685_v22, %v871_v55 }
 0x142   : > { %v1611_v31 = vmul.f32 %v2781_v48, %v1591_v45  ;;  %v1612_v25 = vmul.f32 %v2781_v48, %v1592_v24  ;;  %v1641_v10 = vunpack.c.l.bf16 %v1526_v29  ;;  %v912_v3 = vadd.f32 %v2695_v26, %v898_v23 }
 0x143   : > { %v1609_v36 = vmul.f32 %v2781_v48, %v1589_v4  ;;  %v1610_v8 = vmul.f32 %v2781_v48, %v1590_v2  ;;  %v899_v9 = vmul.f32 %v2197_v35, %v2685_v22  ;;  %v910_v47 = vadd.f32 %v2695_v26, %v896_v11 }
 0x144   : > { %v1627_v63 = vadd.f32 %v1611_v31, %v1510_v20  ;;  %v897_v49 = vmul.f32 %v2685_v22, %v874_v0  ;;  %v1628_v60 = vadd.f32 %v1612_v25, %v1511_v44  ;;  %v1653_v18 = vmul.f32 %v2784_v53, %v1641_v10 }
 0x145   : > { %v1625_v58 = vadd.f32 %v1609_v36, %v1508_v30  ;;  %v1626_v1 = vadd.f32 %v1610_v8, %v1509_v19  ;;  %v920_v45 = vmax.f32 %v912_v3, 0.0  ;;  %v913_v16 = vadd.f32 %v2695_v26, %v899_v9 }
 0x146   : > { %v3142_v29 = vunpack.c.l.bf16 %v2805_v57  ;;  %v1709_v4 = vunpack.c.l.bf16 %v1701_v59  ;;  %v918_v2 = vmax.f32 %v910_v47, 0.0  ;;  %v911_v50 = vadd.f32 %v2695_v26, %v897_v49 }
 0x147   : > { %v1669_v30 = vrot.slane %v1653_v18, 1  ;;  %v1710_v39 = vunpack.c.h.bf16 %v1701_v59  ;;  %v928_v19 = vpack.c.bf16 %v920_v45, %v920_v45  ;;  %v921_v24 = vmax.f32 %v913_v16, 0.0 }
 0x148   : > { %v1654_v20 = vmul.f32 %v2784_v53, %v3142_v29  ;;  %v1712_v22 = vunpack.c.h.bf16 %v2807_v54  ;;  %v926_v23 = vpack.c.bf16 %v918_v2, %v918_v2  ;;  %v919_v55 = vmax.f32 %v911_v50, 0.0 }
 0x149   : > { %v1685_v44 = vadd.f32 %v1669_v30, %v1625_v58  ;;  %v1686_v36 = vadd.f32 %v1669_v30, %v1626_v1  ;;  %936 = vst [vmem:[#allocation2 + $0x78] sm:$0xf] %v928_v19  ;;  %v929_v57 = vpack.c.bf16 %v921_v24, %v921_v24  ;;  %v1729_v35 = vmul.f32 %v2810_v7, %v1709_v4 }
 0x14a   : > { %v1670_v31 = vrot.slane %v1654_v20, 1  ;;  %934 = vst [vmem:[#allocation2 + $0x58] sm:$0xf] %v926_v23  ;;  %v927_v26 = vpack.c.bf16 %v919_v55, %v919_v55  ;;  %v1730_v25 = vmul.f32 %v2810_v7, %v1710_v39  ;;  %v3143_v10 = vunpack.c.l.bf16 %v2807_v54  ;;  %v1117_v39 = vld [vmem:[#allocation2 + $0x28] sm:$0x1f] }
 0x14b   : > { %v1732_v3 = vmul.f32 %v2810_v7, %v1712_v22  ;;  %937 = vst [vmem:[#allocation2 + $0x88] sm:$0xf] %v929_v57  ;;  %v1761_v9 = vrot.slane %v1729_v35, 2  ;;  %v3144_v0 = vrot.slane %v2819_v12, 4  ;;  %v3145_v58 = vrot.slane %v2711_v40, 4 }
 0x14c   : > { %v1687_v8 = vadd.f32 %v1670_v31, %v1627_v63  ;;  %v1688_v11 = vadd.f32 %v1670_v31, %v1628_v60  ;;  %v1731_v59 = vmul.f32 %v2810_v7, %v3143_v10  ;;  %v3146_v1 = vrot.slane %v2803_v32, 4  ;;  %935 = vst [vmem:[#allocation2 + $0x68] sm:$0xf] %v927_v26  ;;  %v1118_v22 = vld [vmem:[#allocation2 + $0x38] sm:$0x1f] }
 0x14d   : > { %v979_v63 = vsel %vm817_vm0, %v3145_v58, %v3144_v0  ;;  %v3147_v47 = vrot.slane %v2716_v46, 4  ;;  %v1057_v54 = vunpack.c.l.bf16 %v2819_v12  ;;  %v1762_v60 = vrot.slane %v1730_v25, 2 }
 0x14e   : > { %v1764_v18 = vrot.slane %v1731_v59, 2  ;;  %v1765_v45 = vrot.slane %v1732_v3, 2  ;;  %v1007_v16 = vunpack.c.l.bf16 %v979_v63  ;;  %v1801_v29 = vadd.f32 %v1761_v9, %v1685_v44 }
 0x14f   : > { %v982_v49 = vsel %vm817_vm0, %v3147_v47, %v3146_v1  ;;  %v1008_v20 = vunpack.c.h.bf16 %v979_v63  ;;  %v1763_v40 = vsel %vm1175_vm3, %v1761_v9, %v1762_v60  ;;  %v1058_v57 = vunpack.c.l.bf16 %v2803_v32 }
 0x150   : > { %v1009_v4 = vunpack.c.l.bf16 %v982_v49  ;;  %v1010_v2 = vunpack.c.h.bf16 %v982_v49  ;;  %v1766_v50 = vsel %vm1175_vm3, %v1764_v18, %v1765_v45  ;;  %v1803_v30 = vadd.f32 %v1764_v18, %v1687_v8  ;;  %v1237_v49 = vld [vmem:[#allocation2 + $0x38] sm:$0xf] }
 0x151   : > { %v1027_v46 = vmul.f32 %v2679_v21, %v1007_v16  ;;  %v1802_v19 = vadd.f32 %v1763_v40, %v1686_v36  ;;  %v1804_v24 = vadd.f32 %v1766_v50, %v1688_v11  ;;  %v1834_v12 = vrot.slane %v1801_v29, 7 }
 0x152   : > { %v1028_v31 = vmul.f32 %v2679_v21, %v1008_v20  ;;  %v1837_v23 = vrot.slane %v1803_v30, 7  ;;  %v1029_v55 = vmul.f32 %v2679_v21, %v1009_v4  ;;  %v1030_v44 = vmul.f32 %v2679_v21, %v1010_v2 }
 0x153   : > { %v1835_v35 = vrot.slane %v1802_v19, 7  ;;  %v1838_v26 = vrot.slane %v1804_v24, 7  ;;  %v1069_v8 = vmul.f32 %v2670_v6, %v1057_v54  ;;  %v1127_v25 = vunpack.c.l.bf16 %v1117_v39  ;;  %v1239_v54 = vld [vmem:[#allocation2 + $0x48] sm:$0xf] }
 0x154   : > { %v1070_v10 = vmul.f32 %v2670_v6, %v1058_v57  ;;  %v1128_v36 = vunpack.c.h.bf16 %v1117_v39  ;;  %v1129_v11 = vunpack.c.l.bf16 %v1118_v22  ;;  %v1130_v59 = vunpack.c.h.bf16 %v1118_v22 }
 0x155   : > { %v1836_v3 = vsel %vm1833_vm4, %v1834_v12, %v1835_v35  ;;  %v1839_v9 = vsel %vm1833_vm4, %v1837_v23, %v1838_v26  ;;  %v1085_v0 = vrot.slane %v1069_v8, 1  ;;  %v1147_v58 = vmul.f32 %v2674_v13, %v1127_v25  ;;  %v1410_v23 = vld [vmem:[#allocation2 + $0x38] sm:$0x1f] }
 0x156   : > { %v1866_v63 = vpack.c.bf16 %v1839_v9, %v1836_v3  ;;  %v1086_v1 = vrot.slane %v1070_v10, 1  ;;  %v1148_v32 = vmul.f32 %v2674_v13, %v1128_v36  ;;  %v1149_v47 = vmul.f32 %v2674_v13, %v1129_v11  ;;  %v1411_v36 = vld [vmem:[#allocation2 + $0x48] sm:$0x1f] }
 0x157   : > { %v1103_v60 = vadd.f32 %v1085_v0, %v1027_v46  ;;  %v1104_v18 = vadd.f32 %v1085_v0, %v1028_v31  ;;  %v1150_v45 = vmul.f32 %v2674_v13, %v1130_v59  ;;  %v1182_v16 = vrot.slane %v1147_v58, 2 }
 0x158   : > { %2214 = vmatprep.mubr.bf16.mxu0 %v1866_v63  ;;  %v1105_v29 = vadd.f32 %v1086_v1, %v1029_v55  ;;  %v1106_v20 = vadd.f32 %v1086_v1, %v1030_v44  ;;  %v1183_v4 = vrot.slane %v1148_v32, 2  ;;  %v1185_v2 = vrot.slane %v1149_v47, 2 }
 0x159   : > { %v1186_v40 = vrot.slane %v1150_v45, 2  ;;  %v1220_v50 = vadd.f32 %v1182_v16, %v1103_v60  ;;  %v1271_v30 = vrot.slane %v1237_v49, 4  ;;  %v1274_v39 = vrot.slane %v1239_v54, 4 }
 0x15a   : > { %v1184_v19 = vsel %vm1175_vm3, %v1182_v16, %v1183_v4  ;;  %v1222_v24 = vadd.f32 %v1185_v2, %v1105_v29  ;;  %v1350_v12 = vunpack.c.l.bf16 %v1237_v49  ;;  %v1351_v22 = vunpack.c.l.bf16 %v1239_v54  ;;  %v1530_v4 = vld [vmem:[#allocation2 + $0x48] sm:$0xf] }
 0x15b   : > { %v1187_v46 = vsel %vm1175_vm3, %v1185_v2, %v1186_v40  ;;  %v1221_v31 = vadd.f32 %v1184_v19, %v1104_v18  ;;  %v3148_v57 = vrot.slane %v2722_v51, 4  ;;  %v3149_v44 = vrot.slane %v2724_v52, 4  ;;  %v1532_v2 = vld [vmem:[#allocation2 + $0x58] sm:$0xf] }
 0x15c   : > { %v1223_v26 = vadd.f32 %v1187_v46, %v1106_v20  ;;  %v1362_v59 = vmul.f32 %v2765_v38, %v1350_v12  ;;  %v1363_v3 = vmul.f32 %v2765_v38, %v1351_v22  ;;  %v1420_v9 = vunpack.c.l.bf16 %v1410_v23 }
 0x15d   : > { %v1272_v55 = vsel %vm817_vm0, %v3148_v57, %v1271_v30  ;;  %v1275_v35 = vsel %vm817_vm0, %v3149_v44, %v1274_v39  ;;  %v1421_v52 = vunpack.c.h.bf16 %v1410_v23  ;;  %v1422_v47 = vunpack.c.l.bf16 %v1411_v36 }
 0x15e   : > { %v1300_v8 = vunpack.c.l.bf16 %v1272_v55  ;;  %v1301_v25 = vunpack.c.h.bf16 %v1272_v55  ;;  %v1302_v10 = vunpack.c.l.bf16 %v1275_v35  ;;  %v1303_v11 = vunpack.c.h.bf16 %v1275_v35 }
 0x15f   : > { %v1378_v1 = vrot.slane %v1362_v59, 1  ;;  %v1379_v32 = vrot.slane %v1363_v3, 1  ;;  %v1423_v18 = vunpack.c.h.bf16 %v1411_v36  ;;  %v1440_v16 = vmul.f32 %v2768_v15, %v1420_v9 }
 0x160   : > { %v1320_v0 = vmul.f32 %v2762_v37, %v1300_v8  ;;  %v1321_v51 = vmul.f32 %v2762_v37, %v1301_v25  ;;  %v1322_v58 = vmul.f32 %v2762_v37, %v1302_v10  ;;  %v1323_v63 = vmul.f32 %v2762_v37, %v1303_v11  ;;  %v1703_v8 = vld [vmem:[#allocation2 + $0x48] sm:$0x1f] }
 0x161   : > { %v1441_v29 = vmul.f32 %v2768_v15, %v1421_v52  ;;  %v1442_v20 = vmul.f32 %v2768_v15, %v1422_v47  ;;  %v1443_v19 = vmul.f32 %v2768_v15, %v1423_v18  ;;  %v1474_v22 = vrot.slane %v1440_v16, 2  ;;  %v1704_v52 = vld [vmem:[#allocation2 + $0x58] sm:$0x1f] }
 0x162   : > { %v1336_v49 = vadd.f32 %v1320_v0, %v1220_v50  ;;  %v1337_v54 = vadd.f32 %v1321_v51, %v1221_v31  ;;  %v1338_v60 = vadd.f32 %v1322_v58, %v1222_v24  ;;  %v1339_v45 = vadd.f32 %v1323_v63, %v1223_v26 }
 0x163   : > { %v1475_v50 = vrot.slane %v1441_v29, 2  ;;  %v1477_v23 = vrot.slane %v1442_v20, 2  ;;  %v1478_v24 = vrot.slane %v1443_v19, 2  ;;  %v1564_v46 = vrot.slane %v1530_v4, 4 }
 0x164   : > { %v1396_v40 = vadd.f32 %v1378_v1, %v1336_v49  ;;  %v1397_v30 = vadd.f32 %v1378_v1, %v1337_v54  ;;  %v1398_v39 = vadd.f32 %v1379_v32, %v1338_v60  ;;  %v1399_v12 = vadd.f32 %v1379_v32, %v1339_v45 }
 0x165   : > { %v1567_v31 = vrot.slane %v1532_v2, 4  ;;  %v1643_v57 = vunpack.c.l.bf16 %v1530_v4  ;;  %v1476_v55 = vsel %vm1175_vm3, %v1474_v22, %v1475_v50  ;;  %v1644_v26 = vunpack.c.l.bf16 %v1532_v2 }
 0x166   : > { %v1512_v44 = vadd.f32 %v1474_v22, %v1396_v40  ;;  %v1514_v35 = vadd.f32 %v1477_v23, %v1398_v39  ;;  %v1479_v25 = vsel %vm1175_vm3, %v1477_v23, %v1478_v24  ;;  %v1513_v10 = vadd.f32 %v1476_v55, %v1397_v30  ;;  %v949_v22 = vld [vmem:[#allocation2 + $0x58] sm:$0xf] }
 0x167   : > { %v3150_v36 = vrot.slane %v2728_v17, 4  ;;  %v3151_v59 = vrot.slane %v2730_v56, 4  ;;  %v1515_v9 = vadd.f32 %v1479_v25, %v1399_v12  ;;  %v1655_v1 = vmul.f32 %v2784_v53, %v1643_v57  ;;  %v947_v12 = vld [vmem:[#allocation2 + $0x48] sm:$0xf] }
 0x168   : > { %v1656_v32 = vmul.f32 %v2784_v53, %v1644_v26  ;;  %v1713_v47 = vunpack.c.l.bf16 %v1703_v8  ;;  %v1714_v56 = vunpack.c.h.bf16 %v1703_v8  ;;  %v1715_v16 = vunpack.c.l.bf16 %v1704_v52 }
 0x169   : > { %v1565_v11 = vsel %vm817_vm0, %v3150_v36, %v1564_v46  ;;  %v1568_v3 = vsel %vm817_vm0, %v3151_v59, %v1567_v31  ;;  %v1671_v18 = vrot.slane %v1655_v1, 1  ;;  %v1716_v2 = vunpack.c.h.bf16 %v1704_v52 }
 0x16a   : > { %v1593_v0 = vunpack.c.l.bf16 %v1565_v11  ;;  %v1594_v51 = vunpack.c.h.bf16 %v1565_v11  ;;  %v1595_v58 = vunpack.c.l.bf16 %v1568_v3  ;;  %v1596_v63 = vunpack.c.h.bf16 %v1568_v3 }
 0x16b   : > { %v1672_v45 = vrot.slane %v1656_v32, 1  ;;  %v1733_v30 = vmul.f32 %v2810_v7, %v1713_v47  ;;  %v1734_v39 = vmul.f32 %v2810_v7, %v1714_v56  ;;  %v1735_v19 = vmul.f32 %v2810_v7, %v1715_v16 }
 0x16c   : > { %v1613_v49 = vmul.f32 %v2781_v48, %v1593_v0  ;;  %v1614_v17 = vmul.f32 %v2781_v48, %v1594_v51  ;;  %v1615_v54 = vmul.f32 %v2781_v48, %v1595_v58  ;;  %v1616_v60 = vmul.f32 %v2781_v48, %v1596_v63 }
 0x16d   : > { %v1736_v46 = vmul.f32 %v2810_v7, %v1716_v2  ;;  %v1767_v57 = vrot.slane %v1733_v30, 2  ;;  %v1768_v55 = vrot.slane %v1734_v39, 2  ;;  %v984_v26 = vrot.slane %v947_v12, 4 }
 0x16e   : > { %v1629_v29 = vadd.f32 %v1613_v49, %v1512_v44  ;;  %v1630_v20 = vadd.f32 %v1614_v17, %v1513_v10  ;;  %v1631_v4 = vadd.f32 %v1615_v54, %v1514_v35  ;;  %v1632_v40 = vadd.f32 %v1616_v60, %v1515_v9  ;;  %v1119_v60 = vld [vmem:[#allocation2 + $0x48] sm:$0x1f] }
 0x16f   : > { %v1770_v44 = vrot.slane %v1735_v19, 2  ;;  %v1771_v35 = vrot.slane %v1736_v46, 2  ;;  %v987_v8 = vrot.slane %v949_v22, 4  ;;  %v1059_v25 = vunpack.c.l.bf16 %v947_v12  ;;  %v1243_v46 = vld [vmem:[#allocation2 + $0x68] sm:$0xf] }
 0x170   : > { %v1689_v50 = vadd.f32 %v1671_v18, %v1629_v29  ;;  %v1690_v23 = vadd.f32 %v1671_v18, %v1630_v20  ;;  %v1691_v24 = vadd.f32 %v1672_v45, %v1631_v4  ;;  %v1692_v31 = vadd.f32 %v1672_v45, %v1632_v40  ;;  %v1120_v29 = vld [vmem:[#allocation2 + $0x58] sm:$0x1f] }
 0x171   : > { %v1769_v10 = vsel %vm1175_vm3, %v1767_v57, %v1768_v55  ;;  %v1060_v59 = vunpack.c.l.bf16 %v949_v22  ;;  %v1772_v3 = vsel %vm1175_vm3, %v1770_v44, %v1771_v35  ;;  %v3152_v0 = vrot.slane %v2734_v61, 4 }
 0x172   : > { %v1805_v36 = vadd.f32 %v1767_v57, %v1689_v50  ;;  %v1807_v11 = vadd.f32 %v1770_v44, %v1691_v24  ;;  %v1806_v9 = vadd.f32 %v1769_v10, %v1690_v23  ;;  %v3153_v58 = vrot.slane %v2736_v62, 4  ;;  %v1241_v24 = vld [vmem:[#allocation2 + $0x58] sm:$0xf] }
 0x173   : > { %v985_v51 = vsel %vm817_vm0, %v3152_v0, %v984_v26  ;;  %v1808_v63 = vadd.f32 %v1772_v3, %v1692_v31  ;;  %v1071_v61 = vmul.f32 %v2670_v6, %v1059_v25  ;;  %v1072_v16 = vmul.f32 %v2670_v6, %v1060_v59 }
 0x174   : > { %v988_v52 = vsel %vm817_vm0, %v3153_v58, %v987_v8  ;;  %v1840_v1 = vrot.slane %v1805_v36, 7  ;;  %v1843_v32 = vrot.slane %v1807_v11, 7  ;;  %v1011_v47 = vunpack.c.l.bf16 %v985_v51 }
 0x175   : > { %v1841_v49 = vrot.slane %v1806_v9, 7  ;;  %v1012_v17 = vunpack.c.h.bf16 %v985_v51  ;;  %v1013_v54 = vunpack.c.l.bf16 %v988_v52  ;;  %v1014_v56 = vunpack.c.h.bf16 %v988_v52 }
 0x176   : > { %v1844_v18 = vrot.slane %v1808_v63, 7  ;;  %v1031_v45 = vmul.f32 %v2679_v21, %v1011_v47  ;;  %v1087_v30 = vrot.slane %v1071_v61, 1  ;;  %v1088_v39 = vrot.slane %v1072_v16, 1  ;;  %v1413_v16 = vld [vmem:[#allocation2 + $0x68] sm:$0x1f] }
 0x177   : > { %v1842_v62 = vsel %vm1833_vm4, %v1840_v1, %v1841_v49  ;;  %v1032_v20 = vmul.f32 %v2679_v21, %v1012_v17  ;;  %v1033_v4 = vmul.f32 %v2679_v21, %v1013_v54  ;;  %v1034_v2 = vmul.f32 %v2679_v21, %v1014_v56 }
 0x178   : > { %v1845_v40 = vsel %vm1833_vm4, %v1843_v32, %v1844_v18  ;;  %v1131_v19 = vunpack.c.l.bf16 %v1119_v60  ;;  %v1132_v22 = vunpack.c.h.bf16 %v1119_v60  ;;  %v1133_v50 = vunpack.c.l.bf16 %v1120_v29  ;;  %v1412_v60 = vld [vmem:[#allocation2 + $0x58] sm:$0x1f] }
 0x179   : > { %v1867_v12 = vpack.c.bf16 %v1845_v40, %v1842_v62  ;;  %v1134_v23 = vunpack.c.h.bf16 %v1120_v29  ;;  %v1107_v31 = vadd.f32 %v1087_v30, %v1031_v45  ;;  %v1108_v57 = vadd.f32 %v1087_v30, %v1032_v20 }
 0x17a   : > { %v1109_v55 = vadd.f32 %v1088_v39, %v1033_v4  ;;  %v1110_v44 = vadd.f32 %v1088_v39, %v1034_v2  ;;  %v1151_v35 = vmul.f32 %v2674_v13, %v1131_v19  ;;  %v1152_v26 = vmul.f32 %v2674_v13, %v1132_v22 }
 0x17b   : > { %2215 = vmatmul.mubr.bf16.vlgmr.msra.gmra.mrb[8].mxu0 %v1867_v12  ;;  %v1153_v8 = vmul.f32 %v2674_v13, %v1133_v50  ;;  %v1154_v25 = vmul.f32 %v2674_v13, %v1134_v23  ;;  %v1277_v10 = vrot.slane %v1241_v24, 4  ;;  %v1280_v36 = vrot.slane %v1243_v46, 4 }
 0x17c   : > { %v1352_v11 = vunpack.c.l.bf16 %v1241_v24  ;;  %v1353_v59 = vunpack.c.l.bf16 %v1243_v46  ;;  %v1188_v3 = vrot.slane %v1151_v35, 2  ;;  %v1189_v9 = vrot.slane %v1152_v26, 2  ;;  %v1534_v35 = vld [vmem:[#allocation2 + $0x68] sm:$0xf]  ;;  %v1536_v26 = vld [vmem:[#allocation2 + $0x78] sm:$0xf] }
 0x17d   : > { %v1191_v0 = vrot.slane %v1153_v8, 2  ;;  %v1192_v51 = vrot.slane %v1154_v25, 2  ;;  %v3154_v58 = vrot.slane %v2751_v27, 4  ;;  %v3155_v63 = vrot.slane %v2753_v28, 4 }
 0x17e   : > { %v1364_v32 = vmul.f32 %v2765_v38, %v1352_v11  ;;  %v1365_v47 = vmul.f32 %v2765_v38, %v1353_v59  ;;  %v1190_v49 = vsel %vm1175_vm3, %v1188_v3, %v1189_v9  ;;  %v1224_v54 = vadd.f32 %v1188_v3, %v1107_v31 }
 0x17f   : > { %v1278_v52 = vsel %vm817_vm0, %v3154_v58, %v1277_v10  ;;  %v1281_v1 = vsel %vm817_vm0, %v3155_v63, %v1280_v36  ;;  %v1193_v17 = vsel %vm1175_vm3, %v1191_v0, %v1192_v51  ;;  %v1226_v56 = vadd.f32 %v1191_v0, %v1109_v55 }
 0x180   : > { %v1225_v18 = vadd.f32 %v1190_v49, %v1108_v57  ;;  %v1227_v45 = vadd.f32 %v1193_v17, %v1110_v44  ;;  %v1304_v27 = vunpack.c.l.bf16 %v1278_v52  ;;  %v1305_v61 = vunpack.c.h.bf16 %v1278_v52  ;;  %v1705_v49 = vld [vmem:[#allocation2 + $0x68] sm:$0x1f] }
 0x181   : > { %v1306_v29 = vunpack.c.l.bf16 %v1281_v1  ;;  %v1307_v28 = vunpack.c.h.bf16 %v1281_v1  ;;  %v1380_v62 = vrot.slane %v1364_v32, 1  ;;  %v1381_v20 = vrot.slane %v1365_v47, 1 }
 0x182   : > { %v1324_v4 = vmul.f32 %v2762_v37, %v1304_v27  ;;  %v1325_v2 = vmul.f32 %v2762_v37, %v1305_v61  ;;  %v1424_v40 = vunpack.c.l.bf16 %v1412_v60  ;;  %v1425_v30 = vunpack.c.h.bf16 %v1412_v60 }
 0x183   : > { %v1326_v39 = vmul.f32 %v2762_v37, %v1306_v29  ;;  %v1327_v19 = vmul.f32 %v2762_v37, %v1307_v28  ;;  %v1426_v12 = vunpack.c.l.bf16 %v1413_v16  ;;  %v1427_v22 = vunpack.c.h.bf16 %v1413_v16  ;;  %v1706_v28 = vld [vmem:[#allocation2 + $0x78] sm:$0x1f] }
 0x184   : > { %v1340_v50 = vadd.f32 %v1324_v4, %v1224_v54  ;;  %v1341_v23 = vadd.f32 %v1325_v2, %v1225_v18  ;;  %v1444_v24 = vmul.f32 %v2768_v15, %v1424_v40  ;;  %v1445_v46 = vmul.f32 %v2768_v15, %v1425_v30 }
 0x185   : > { %v1342_v31 = vadd.f32 %v1326_v39, %v1226_v56  ;;  %v1343_v57 = vadd.f32 %v1327_v19, %v1227_v45  ;;  %v1446_v55 = vmul.f32 %v2768_v15, %v1426_v12  ;;  %v1447_v44 = vmul.f32 %v2768_v15, %v1427_v22 }
 0x186   : > { %v1400_v8 = vadd.f32 %v1380_v62, %v1340_v50  ;;  %v1401_v25 = vadd.f32 %v1380_v62, %v1341_v23  ;;  %v1480_v10 = vrot.slane %v1444_v24, 2  ;;  %v1481_v36 = vrot.slane %v1445_v46, 2 }
 0x187   : > { %v1402_v11 = vadd.f32 %v1381_v20, %v1342_v31  ;;  %v1403_v59 = vadd.f32 %v1381_v20, %v1343_v57  ;;  %v1483_v3 = vrot.slane %v1446_v55, 2  ;;  %v1484_v9 = vrot.slane %v1447_v44, 2 }
 0x188   : > { %v1482_v0 = vsel %vm1175_vm3, %v1480_v10, %v1481_v36  ;;  %v1516_v51 = vadd.f32 %v1480_v10, %v1400_v8  ;;  %v1570_v58 = vrot.slane %v1534_v35, 4  ;;  %v1573_v52 = vrot.slane %v1536_v26, 4 }
 0x189   : > { %v1485_v63 = vsel %vm1175_vm3, %v1483_v3, %v1484_v9  ;;  %v1517_v1 = vadd.f32 %v1482_v0, %v1401_v25  ;;  %v1518_v32 = vadd.f32 %v1483_v3, %v1402_v11  ;;  %v1645_v47 = vunpack.c.l.bf16 %v1534_v35  ;;  %v951_v35 = vld [vmem:[#allocation2 + $0x68] sm:$0xf] }
 0x18a   : > { %v1519_v17 = vadd.f32 %v1485_v63, %v1403_v59  ;;  %v3156_v54 = vrot.slane %v2755_v33, 4  ;;  %v3157_v60 = vrot.slane %v2757_v34, 4  ;;  %v1646_v45 = vunpack.c.l.bf16 %v1536_v26  ;;  %v953_v26 = vld [vmem:[#allocation2 + $0x78] sm:$0xf] }
 0x18b   : > { %v1657_v62 = vmul.f32 %v2784_v53, %v1645_v47  ;;  %v1717_v4 = vunpack.c.l.bf16 %v1705_v49  ;;  %v1718_v2 = vunpack.c.h.bf16 %v1705_v49  ;;  %v1719_v12 = vunpack.c.l.bf16 %v1706_v28 }
 0x18c   : > { %v1571_v56 = vsel %vm817_vm0, %v3156_v54, %v1570_v58  ;;  %v1574_v18 = vsel %vm817_vm0, %v3157_v60, %v1573_v52  ;;  %v1658_v20 = vmul.f32 %v2784_v53, %v1646_v45  ;;  %v1720_v22 = vunpack.c.h.bf16 %v1706_v28 }
 0x18d   : > { %v1597_v27 = vunpack.c.l.bf16 %v1571_v56  ;;  %v1598_v61 = vunpack.c.h.bf16 %v1571_v56  ;;  %v1599_v16 = vunpack.c.l.bf16 %v1574_v18  ;;  %v1600_v29 = vunpack.c.h.bf16 %v1574_v18 }
 0x18e   : > { %v1673_v39 = vrot.slane %v1657_v62, 1  ;;  %v1674_v19 = vrot.slane %v1658_v20, 1  ;;  %v1737_v31 = vmul.f32 %v2810_v7, %v1717_v4  ;;  %v1738_v57 = vmul.f32 %v2810_v7, %v1718_v2  ;;  %v1121_v4 = vld [vmem:[#allocation2 + $0x68] sm:$0x1f] }
 0x18f   : > { %v1617_v33 = vmul.f32 %v2781_v48, %v1597_v27  ;;  %v1618_v40 = vmul.f32 %v2781_v48, %v1598_v61  ;;  %v1619_v34 = vmul.f32 %v2781_v48, %v1599_v16  ;;  %v1620_v30 = vmul.f32 %v2781_v48, %v1600_v29 }
 0x190   : > { %v1739_v55 = vmul.f32 %v2810_v7, %v1719_v12  ;;  %v1740_v44 = vmul.f32 %v2810_v7, %v1720_v22  ;;  %v1773_v11 = vrot.slane %v1737_v31, 2  ;;  %v1774_v59 = vrot.slane %v1738_v57, 2 }
 0x191   : > { %v1633_v50 = vadd.f32 %v1617_v33, %v1516_v51  ;;  %v1634_v23 = vadd.f32 %v1618_v40, %v1517_v1  ;;  %v1635_v24 = vadd.f32 %v1619_v34, %v1518_v32  ;;  %v1636_v46 = vadd.f32 %v1620_v30, %v1519_v17  ;;  %v1245_v34 = vld [vmem:[#allocation2 + $0x78] sm:$0xf] }
 0x192   : > { %v1776_v3 = vrot.slane %v1739_v55, 2  ;;  %v1777_v9 = vrot.slane %v1740_v44, 2  ;;  %v990_v0 = vrot.slane %v951_v35, 4  ;;  %v993_v51 = vrot.slane %v953_v26, 4  ;;  %v1247_v55 = vld [vmem:[#allocation2 + $0x88] sm:$0xf] }
 0x193   : > { %v1693_v8 = vadd.f32 %v1673_v39, %v1633_v50  ;;  %v1694_v25 = vadd.f32 %v1673_v39, %v1634_v23  ;;  %v1695_v10 = vadd.f32 %v1674_v19, %v1635_v24  ;;  %v1696_v36 = vadd.f32 %v1674_v19, %v1636_v46 }
 0x194   : > { %v1061_v58 = vunpack.c.l.bf16 %v951_v35  ;;  %v1062_v52 = vunpack.c.l.bf16 %v953_v26  ;;  %v1775_v63 = vsel %vm1175_vm3, %v1773_v11, %v1774_v59  ;;  %v1778_v1 = vsel %vm1175_vm3, %v1776_v3, %v1777_v9 }
 0x195   : > { %v1809_v32 = vadd.f32 %v1773_v11, %v1693_v8  ;;  %v1811_v47 = vadd.f32 %v1776_v3, %v1695_v10  ;;  %v1810_v49 = vadd.f32 %v1775_v63, %v1694_v25  ;;  %v1812_v17 = vadd.f32 %v1778_v1, %v1696_v36 }
 0x196   : > { %v3158_v54 = vrot.slane %v2770_v41, 4  ;;  %v3159_v60 = vrot.slane %v2759_v14, 4  ;;  %v1073_v41 = vmul.f32 %v2670_v6, %v1061_v58  ;;  %v1074_v40 = vmul.f32 %v2670_v6, %v1062_v52  ;;  %v1122_v14 = vld [vmem:[#allocation2 + $0x78] sm:$0x1f] }
 0x197   : > { %v1846_v45 = vrot.slane %v1809_v32, 7  ;;  %v1849_v27 = vrot.slane %v1811_v47, 7  ;;  %v1847_v29 = vrot.slane %v1810_v49, 7  ;;  %v1850_v28 = vrot.slane %v1812_v17, 7 }
 0x198   : > { %v991_v56 = vsel %vm817_vm0, %v3158_v54, %v990_v0  ;;  %v994_v18 = vsel %vm817_vm0, %v3159_v60, %v993_v51  ;;  %v1089_v50 = vrot.slane %v1073_v41, 1  ;;  %v1090_v23 = vrot.slane %v1074_v40, 1  ;;  %v1414_v60 = vld [vmem:[#allocation2 + $0x78] sm:$0x1f] }
 0x199   : > { %v1015_v61 = vunpack.c.l.bf16 %v991_v56  ;;  %v1016_v16 = vunpack.c.h.bf16 %v991_v56  ;;  %v1017_v62 = vunpack.c.l.bf16 %v994_v18  ;;  %v1018_v20 = vunpack.c.h.bf16 %v994_v18 }
 0x19a   : > { %v1848_v30 = vsel %vm1833_vm4, %v1846_v45, %v1847_v29  ;;  %v1851_v39 = vsel %vm1833_vm4, %v1849_v27, %v1850_v28  ;;  %v1135_v24 = vunpack.c.l.bf16 %v1121_v4  ;;  %v1136_v46 = vunpack.c.h.bf16 %v1121_v4 }
 0x19b   : > { %v1035_v2 = vmul.f32 %v2679_v21, %v1015_v61  ;;  %v1036_v33 = vmul.f32 %v2679_v21, %v1016_v16  ;;  %v1037_v19 = vmul.f32 %v2679_v21, %v1017_v62  ;;  %v1038_v12 = vmul.f32 %v2679_v21, %v1018_v20  ;;  %v1415_v16 = vld [vmem:[#allocation2 + $0x88] sm:$0x1f] }
 0x19c   : > { %v1868_v22 = vpack.c.bf16 %v1851_v39, %v1848_v30  ;;  %v1137_v31 = vunpack.c.l.bf16 %v1122_v14  ;;  %v1138_v57 = vunpack.c.h.bf16 %v1122_v14  ;;  %v1283_v44 = vrot.slane %v1245_v34, 4 }
 0x19d   : > { %v1111_v6 = vadd.f32 %v1089_v50, %v1035_v2  ;;  %v1112_v35 = vadd.f32 %v1089_v50, %v1036_v33  ;;  %v1113_v26 = vadd.f32 %v1090_v23, %v1037_v19  ;;  %v1114_v8 = vadd.f32 %v1090_v23, %v1038_v12 }
 0x19e   : > { %2218 = vmatprep.mubr.bf16.mxu1 %v1868_v22  ;;  %v1155_v25 = vmul.f32 %v2674_v13, %v1135_v24  ;;  %v1156_v10 = vmul.f32 %v2674_v13, %v1136_v46  ;;  %v1157_v21 = vmul.f32 %v2674_v13, %v1137_v31  ;;  %v1158_v36 = vmul.f32 %v2674_v13, %v1138_v57  ;;  %v1538_v22 = vld [vmem:[#allocation2 + $0x88] sm:$0xf] }
 0x19f   : > { %v3160_v11 = vrot.slane %v2772_v42, 4  ;;  %v1286_v3 = vrot.slane %v1247_v55, 4  ;;  %v1354_v9 = vunpack.c.l.bf16 %v1245_v34  ;;  %v1355_v0 = vunpack.c.l.bf16 %v1247_v55 }
 0x1a0   : > { %v1194_v51 = vrot.slane %v1155_v25, 2  ;;  %v1195_v58 = vrot.slane %v1156_v10, 2  ;;  %v1197_v52 = vrot.slane %v1157_v21, 2  ;;  %v1198_v63 = vrot.slane %v1158_v36, 2 }
 0x1a1   : > { %v1284_v59 = vsel %vm817_vm0, %v3160_v11, %v1283_v44  ;;  %v3161_v1 = vrot.slane %v2774_v43, 4  ;;  %v1366_v17 = vmul.f32 %v2765_v38, %v1354_v9  ;;  %v1367_v28 = vmul.f32 %v2765_v38, %v1355_v0  ;;  %v3166_v0 = vld [vmem:[#allocation7_spill] sm:$0xff] }
 0x1a2   : > { %v1308_v47 = vunpack.c.l.bf16 %v1284_v59  ;;  %v1309_v49 = vunpack.c.h.bf16 %v1284_v59  ;;  %v1196_v13 = vsel %vm1175_vm3, %v1194_v51, %v1195_v58  ;;  %v1199_v42 = vsel %vm1175_vm3, %v1197_v52, %v1198_v63 }
 0x1a3   : > { %v1287_v32 = vsel %vm817_vm0, %v3161_v1, %v1286_v3  ;;  %v1228_v54 = vadd.f32 %v1194_v51, %v1111_v6  ;;  %v1230_v56 = vadd.f32 %v1197_v52, %v1113_v26  ;;  %v1229_v18 = vadd.f32 %v1196_v13, %v1112_v35  ;;  %v3164_v3 = vld [vmem:[#allocation6_spill] sm:$0xff]  ;;  %v1707_v52 = vld [vmem:[#allocation2 + $0x88] sm:$0x1f] }
 0x1a4   : > { %v1231_v45 = vadd.f32 %v1199_v42, %v1114_v8  ;;  %v1310_v27 = vunpack.c.l.bf16 %v1287_v32  ;;  %v1311_v61 = vunpack.c.h.bf16 %v1287_v32  ;;  %v1328_v43 = vmul.f32 %v2762_v37, %v1308_v47  ;;  %v1708_v47 = vld [vmem:[#allocation2 + $0x98] sm:$0x1f] }
 0x1a5   : > { %v1329_v29 = vmul.f32 %v2762_v37, %v1309_v49  ;;  %v1382_v62 = vrot.slane %v1366_v17, 1  ;;  %v1428_v2 = vunpack.c.l.bf16 %v1414_v60  ;;  %v1429_v33 = vunpack.c.h.bf16 %v1414_v60 }
 0x1a6   : > { %v1330_v20 = vmul.f32 %v2762_v37, %v1310_v27  ;;  %v1331_v4 = vmul.f32 %v2762_v37, %v1311_v61  ;;  %v1344_v41 = vadd.f32 %v1328_v43, %v1228_v54  ;;  %v1383_v14 = vrot.slane %v1367_v28, 1 }
 0x1a7   : > { %v1345_v40 = vadd.f32 %v1329_v29, %v1229_v18  ;;  %v1430_v34 = vunpack.c.l.bf16 %v1415_v16  ;;  %v1431_v19 = vunpack.c.h.bf16 %v1415_v16  ;;  %v1448_v12 = vmul.f32 %v2768_v15, %v1428_v2 }
 0x1a8   : > { %v1346_v30 = vadd.f32 %v1330_v20, %v1230_v56  ;;  %v1347_v39 = vadd.f32 %v1331_v4, %v1231_v45  ;;  %v1404_v50 = vadd.f32 %v1382_v62, %v1344_v41  ;;  %v1449_v38 = vmul.f32 %v2768_v15, %v1429_v33 }
 0x1a9   : > { %v1405_v23 = vadd.f32 %v1382_v62, %v1345_v40  ;;  %v1450_v24 = vmul.f32 %v2768_v15, %v1430_v34  ;;  %v1451_v31 = vmul.f32 %v2768_v15, %v1431_v19  ;;  %v1486_v57 = vrot.slane %v1448_v12, 2 }
 0x1aa   : > { %v1406_v46 = vadd.f32 %v1383_v14, %v1346_v30  ;;  %v1407_v37 = vadd.f32 %v1383_v14, %v1347_v39  ;;  %v1487_v55 = vrot.slane %v1449_v38, 2  ;;  %v1576_v6 = vrot.slane %v1538_v22, 4 }
 0x1ab   : > { %v1489_v44 = vrot.slane %v1450_v24, 2  ;;  %v3162_v35 = vunpack.c.l.bf16 %v2801_v5  ;;  %v1490_v8 = vrot.slane %v1451_v31, 2  ;;  %v1520_v25 = vadd.f32 %v1486_v57, %v1404_v50 }
 0x1ac   : > { %v3163_v10 = vunpack.c.h.bf16 %v2801_v5  ;;  %v1647_v36 = vunpack.c.l.bf16 %v1538_v22  ;;  %v1488_v11 = vsel %vm1175_vm3, %v1486_v57, %v1487_v55  ;;  %v3165_v15 = vrot.slane %v3164_v3, 4  ;;  %v2163_v57 = vld [vmem:[%s3130_s7] ss:$0 sm:$0xff] }
 0x1ad   : > { %v1623_v26 = vmul.f32 %v2781_v48, %v3162_v35  ;;  %v1522_v59 = vadd.f32 %v1489_v44, %v1406_v46  ;;  %v3167_v51 = vunpack.c.l.bf16 %v3166_v0  ;;  %v1491_v63 = vsel %vm1175_vm3, %v1489_v44, %v1490_v8  ;;  %v2164_v55 = vld [vmem:[%s3131_s8] ss:$0 sm:$0xff] }
 0x1ae   : > { %v1624_v21 = vmul.f32 %v2781_v48, %v3163_v10  ;;  %v1577_v9 = vsel %vm817_vm0, %v3165_v15, %v1576_v6  ;;  %v1521_v1 = vadd.f32 %v1488_v11, %v1405_v23  ;;  %v1523_v49 = vadd.f32 %v1491_v63, %v1407_v37 }
 0x1af   : > { %v1660_v58 = vmul.f32 %v2784_v53, %v3167_v51  ;;  %v1601_v32 = vunpack.c.l.bf16 %v1577_v9  ;;  %v1602_v5 = vunpack.c.h.bf16 %v1577_v9  ;;  %v1639_v17 = vadd.f32 %v1623_v26, %v1522_v59 }
 0x1b0   : > { %v1659_v13 = vmul.f32 %v2784_v53, %v1647_v36  ;;  %v1721_v60 = vunpack.c.l.bf16 %v1707_v52  ;;  %v1722_v18 = vunpack.c.h.bf16 %v1707_v52  ;;  %v1640_v45 = vadd.f32 %v1624_v21, %v1523_v49 }
 0x1b1   : > { %v1676_v42 = vrot.slane %v1660_v58, 1  ;;  %v1621_v54 = vmul.f32 %v2781_v48, %v1601_v32  ;;  %v1622_v56 = vmul.f32 %v2781_v48, %v1602_v5  ;;  %v1723_v61 = vunpack.c.l.bf16 %v1708_v47 }
 0x1b2   : > { %v1675_v27 = vrot.slane %v1659_v13, 1  ;;  %v1724_v29 = vunpack.c.h.bf16 %v1708_v47  ;;  %v1741_v28 = vmul.f32 %v2810_v7, %v1721_v60  ;;  %v1742_v20 = vmul.f32 %v2810_v7, %v1722_v18 }
 0x1b3   : > { %v1637_v16 = vadd.f32 %v1621_v54, %v1520_v25  ;;  %v1638_v43 = vadd.f32 %v1622_v56, %v1521_v1  ;;  %v1699_v62 = vadd.f32 %v1676_v42, %v1639_v17  ;;  %v1743_v53 = vmul.f32 %v2810_v7, %v1723_v61 }
 0x1b4   : > { %v1744_v33 = vmul.f32 %v2810_v7, %v1724_v29  ;;  %v1779_v48 = vrot.slane %v1741_v28, 2  ;;  %v1700_v41 = vadd.f32 %v1676_v42, %v1640_v45  ;;  %v1780_v40 = vrot.slane %v1742_v20, 2 }
 0x1b5   : > { %v1697_v4 = vadd.f32 %v1675_v27, %v1637_v16  ;;  %v1698_v2 = vadd.f32 %v1675_v27, %v1638_v43  ;;  %v1782_v14 = vrot.slane %v1743_v53, 2 }
 0x1b6   : > { %v1783_v34 = vrot.slane %v1744_v33, 2  ;;  %v1781_v39 = vsel %vm1175_vm3, %v1779_v48, %v1780_v40 }
 0x1b7   : > { %v1813_v30 = vadd.f32 %v1779_v48, %v1697_v4  ;;  %v1815_v19 = vadd.f32 %v1782_v14, %v1699_v62  ;;  %v1814_v22 = vadd.f32 %v1781_v39, %v1698_v2 }
 0x1b8   : > { %v1784_v12 = vsel %vm1175_vm3, %v1782_v14, %v1783_v34 }
 0x1b9   : > { %v1852_v50 = vrot.slane %v1813_v30, 7  ;;  %v1816_v23 = vadd.f32 %v1784_v12, %v1700_v41  ;;  %v1855_v38 = vrot.slane %v1815_v19, 7  ;;  %v1853_v24 = vrot.slane %v1814_v22, 7 }
 0x1bb   : > { %v1856_v46 = vrot.slane %v1816_v23, 7  ;;  %v1854_v7 = vsel %vm1833_vm4, %v1852_v50, %v1853_v24 }
 0x1bd   : > { %v1857_v37 = vsel %vm1833_vm4, %v1855_v38, %v1856_v46 }
 0x1be   : > { %v1869_v31 = vpack.c.bf16 %v1857_v37, %v1854_v7 }
 0x1c0   : > { %2219 = vmatmul.mubr.bf16.vlgmr.msra.gmra.mrb[0].mxu1 %v1869_v31 }
 0x24e   : > { %v2216_v44 = vpop.f32.mrb[8].mxu0 }
 0x24f   : > { %v2007_v6 = vmul.f32 %v2216_v44, %v2163_v57  ;;  %v1968_v35 = vpop.f32.mrb[9].mxu0 }
 0x250   : > { %v2005_v26 = vmul.f32 %v2163_v57, %v1968_v35  ;;  %v2217_v8 = vpop.f32.mrb[10].mxu0 }
 0x251   : > { %v2021_v25 = vadd.f32 %v2164_v55, %v2007_v6  ;;  %v2008_v10 = vmul.f32 %v2217_v8, %v2163_v57  ;;  %v1971_v21 = vpop.f32.mrb[11].mxu0 }
 0x252   : > { %v2019_v36 = vadd.f32 %v2164_v55, %v2005_v26  ;;  %v2006_v11 = vmul.f32 %v2163_v57, %v1971_v21 }
 0x253   : > { %2029 = vst [vmem:[%s325_s14 + $0x10] sm:$0xff] %v2021_v25  ;;  %v2022_v59 = vadd.f32 %v2164_v55, %v2008_v10 }
 0x254   : > { %2027 = vst [vmem:[%s325_s14] sm:$0xff] %v2019_v36  ;;  %v2020_v3 = vadd.f32 %v2164_v55, %v2006_v11 }
 0x255   : > { %2030 = vst [vmem:[%s325_s14 + $0x18] sm:$0xff] %v2022_v59 }
 0x256   : > { %2028 = vst [vmem:[%s325_s14 + $0x8] sm:$0xff] %v2020_v3 }
 0x293   : > { %v2220_v15 = vpop.f32.mrb[0].mxu1 }
 0x294   : > { %v2011_v9 = vmul.f32 %v2220_v15, %v2163_v57  ;;  %v1984_v0 = vpop.f32.mrb[1].mxu1 }
 0x295   : > { %v2009_v51 = vmul.f32 %v2163_v57, %v1984_v0  ;;  %v2221_v58 = vpop.f32.mrb[2].mxu1 }
 0x296   : > { %v2025_v52 = vadd.f32 %v2164_v55, %v2011_v9  ;;  %v2012_v63 = vmul.f32 %v2221_v58, %v2163_v57  ;;  %v1987_v1 = vpop.f32.mrb[3].mxu1 }
 0x297   : > { %v2023_v32 = vadd.f32 %v2164_v55, %v2009_v51  ;;  %v2010_v5 = vmul.f32 %v2163_v57, %v1987_v1 }
 0x298   : > { %2033 = vst [vmem:[%s325_s14 + $0x30] sm:$0xff] %v2025_v52  ;;  %v2026_v47 = vadd.f32 %v2164_v55, %v2012_v63 }
 0x299   : > { %2031 = vst [vmem:[%s325_s14 + $0x20] sm:$0xff] %v2023_v32  ;;  %v2024_v49 = vadd.f32 %v2164_v55, %v2010_v5 }
 0x29a   : > { %2034 = vst [vmem:[%s325_s14 + $0x38] sm:$0xff] %v2026_v47 }
 0x29b   : > { %2032 = vst [vmem:[%s325_s14 + $0x28] sm:$0xff] %v2024_v49 }
 0x29c   : > { %2303 = shalt.err (!%p2300_p3)
}
 0x29d   : > { %s2304_s24 = scalar_lea.hbm %s3076_s23, 1024  ;;  %s2308_s16 = scalar_lea.hbm %s3132_s9, 2048 }
 0x29e   : > { %p2305_p4 = scmp.ne.s32.totalorder %s3076_s23, %s2304_s24  ;;  %p2309_p9 = scmp.lt.u32.totalorder %s3076_s23, %s3132_s9 }
 0x29f   : > { %p2310_p10 = scmp.lt.u32.totalorder %s2308_s16, %s2304_s24  ;;  %p2312_p12 = scmp.lt.u32.totalorder %s2304_s24, %s3076_s23 }
 0x2a0   : > { %p2306_p7 = pnand %p2305_p4, %p2446_p5 }
 0x2a1   : > { %p2311_p11 = por %p2310_p10, %p2309_p9 }
 0x2a2   : > { %p2307_p8 = pneg %p2306_p7 }
 0x2a3   : > { %p2313_p13 = por %p2312_p12, %p2311_p11 }
 0x2a5   : > { %p2314_p0 = pnand %p2313_p13, %p2307_p8 }
 0x2a7   : > { %2317 = shalt.err (!%p2314_p0)
}
 0x2a8   : > { %s2356_s25 = smov 128   ;;  %s2357_s26 = smov 8  }
 0x2a9   : > { %2240 = dma.vmem_to_hbm [thread:$0]  (%p2446_p5), %s3078_s17, 1024, %s3076_s23, %s3082_s13, %s2356_s25, %s2356_s25, %s2357_s26  }
 0x2aa PF: > { %p2246_p1 = scmp.ge.s32.totalorder %s2352_s12, 2  ;;  %s2064_s27 = sand.u32 1, %s2340_s30  }
 0x2ab   : > { %s2065_s28 = scalar_lea.sflag [#allocation4], %s2064_s27 }
 0x2ac   : > { %p2243_p2 = pnand %p2246_p1, %p2450_p6 }
 0x2ae   : > { %2335 = dma.done.wait (!%p2243_p2), %s2065_s28, 1024  }
 0x2af   : > { %2337 = vsyncadd (!%p2243_p2), %s2065_s28, 4294966272  ;;  %p19_p3 = scmp.ge.s32.totalorder %s2433_s15, 4   ;;  %s3168_s30 = smov %s2344_s10 }
 0x2b0   : > { %s3169_s10 = smov %s2348_s11  ;;  %s3170_s11 = smov %s2444_s18 }
 0x2b1   : > { %s3171_s12 = smov %s2433_s15  ;;  %21 = sbr.rel (!%p19_p3) target bundleno = 3 (0x3), region = 96 }
 0x2b8   :  { %2070 = vsyncpa [#allocation4], 1 }
 0x2b9   :  { %2072 = vsyncpa [#allocation4 + $0x1], 1 }

</bundles_post_ra>
